<compile_context>
chip_gen: v7x
topology: tpu7x:2x2x1
jax: 0.10.0
libtpu: 0.0.40
codegen_flags: <defaults>
</compile_context>

<pallas_src>
import jax
import jax.numpy as jnp
from jax.experimental import pallas as pl
from jax.experimental.pallas import tpu as pltpu


def _round_up(x, m):
    return ((x + m - 1) // m) * m


# ----------------------------------------------------------------------------
# Pallas classifier kernel
# ----------------------------------------------------------------------------
def _layernorm(x, gamma, beta, eps=1e-5):
    # eps=1e-5 matches nn.LayerNorm default; also keeps zero padded rows finite.
    mu = jnp.mean(x, axis=-1, keepdims=True)
    var = jnp.mean((x - mu) ** 2, axis=-1, keepdims=True)
    return (x - mu) * jax.lax.rsqrt(var + eps) * gamma + beta


def make_classifier_kernel(num_fc_layers, tile_b):
    """Computes 0.5*(sigmoid(MLP(x_fw)) + sigmoid(MLP(x_rc))) for one batch
    tile.  The input block already holds [fw tile ; rc tile] stacked along
    the sublane (row) axis, so a single fused MLP pass covers both branches.

    Ref order: x, [w_i, b_i, gamma_i, beta_i] * num_fc_layers, wl8, b_logits,
               out.
    """

    def kernel(*refs):
        x_ref = refs[0]          # (1, 2*TB, F) bf16 : rows [fw tile ; rc tile]
        out_ref = refs[-1]       # (1, 1, TB) f32    : lane-dense packed probs
        p = refs[1:-1]

        h = x_ref[0]             # (2*TB, F) bf16 — one fused MLP pass, no copy
        for i in range(num_fc_layers):
            w = p[4 * i][...]            # bf16 (d_in, d_out)
            b = p[4 * i + 1][...]        # f32  (1, d_out)
            g = p[4 * i + 2][...]        # f32  (1, d_out)
            be = p[4 * i + 3][...]       # f32  (1, d_out)
            z = jnp.dot(h, w, preferred_element_type=jnp.float32) + b
            z = _layernorm(z, g, be)     # f32 epilogue math
            z = jnp.maximum(z, 0.0)      # ReLU (dropout = identity, eval mode)
            # bf16 into the next MXU pass; keep f32 for the final layer.
            h = z.astype(jnp.bfloat16) if i + 1 < num_fc_layers else z

        wl8 = p[4 * num_fc_layers][...]       # f32 (8, d_last), rows identical
        bl = p[4 * num_fc_layers + 1][...]    # f32 (1, 1)
        # Final N=1 linear layer done as an A @ B^T MXU pass so the batch
        # index ends up on the LANE axis -> lane-dense output with no
        # sublane->lane relayout.  (M is padded to 8 identical rows.)
        logits8 = jnp.einsum("od,nd->on", wl8, h,
                             preferred_element_type=jnp.float32)  # (8, 2*TB)
        logits = logits8[0:1, :] + bl                             # (1, 2*TB)
        probs = jax.nn.sigmoid(logits)                            # f32
        # Sigmoid per branch, then average (reference semantics).
        avg = 0.5 * (probs[:, :tile_b] + probs[:, tile_b:])       # (1, TB)
        out_ref[0] = avg                                          # packed store

    return kernel


def pallas_classifier(embed_fw, embed_rc, clf_params, fc_units):
    """Run the shared classifier on fw and rc embeddings and average."""
    batch, feat = embed_fw.shape
    num_fc_layers = len(fc_units)
    d_last = fc_units[-1]

    # Batch tile: multiple of 128 (bf16 sublane packing + 128-lane packed
    # output), capped at 2048 or by a simple VMEM budget (double-buffered
    # bf16 input block + f32 intermediates stay well under 32 MiB scoped
    # VMEM on every generation).
    dmax = max([feat] + list(fc_units))
    per_row_bytes = 2 * feat * 2 * 2 + 2 * dmax * 4 * 4   # rough estimate
    budget = 12 * 1024 * 1024
    cap = max(128, (budget // per_row_bytes) // 128 * 128)
    tile_b = min(2048, cap, _round_up(batch, 128))
    padded = _round_up(batch, tile_b)
    num_tiles = padded // tile_b

    if padded != batch:
        pad = ((0, padded - batch), (0, 0))
        embed_fw = jnp.pad(embed_fw, pad)
        embed_rc = jnp.pad(embed_rc, pad)

    # Pre-interleave per batch tile in the wrapper: tile i holds
    # [fw rows of tile i ; rc rows of tile i].  One input operand, one DMA
    # stream, no in-kernel concatenate.  Fuses with the f32->bf16 cast in XLA.
    x = jnp.stack([embed_fw, embed_rc], axis=0)            # (2, padded, F)
    x = x.reshape(2, num_tiles, tile_b, feat)
    x = jnp.transpose(x, (1, 0, 2, 3)).reshape(num_tiles, 2 * tile_b, feat)
    x = x.astype(jnp.bfloat16)

    flat = []
    for (w, b, g, be) in clf_params["layers"]:
        flat += [w.astype(jnp.bfloat16), b.astype(jnp.float32),
                 g.astype(jnp.float32), be.astype(jnp.float32)]
    # Final-layer weight broadcast to 8 identical rows (MXU M-alignment).
    wl8 = jnp.broadcast_to(
        clf_params["logits_w"].reshape(1, d_last).astype(jnp.float32),
        (8, d_last))
    bl = clf_params["logits_b"].reshape(1, 1).astype(jnp.float32)
    flat += [wl8, bl]

    grid = (num_tiles,)
    # Tuning knob: add pipeline_mode=pl.Buffered(3) here if a profile shows
    # exposed input DMA (costs <1 MiB extra VMEM).
    x_spec = pl.BlockSpec((1, 2 * tile_b, feat), lambda i: (i, 0, 0))
    param_specs = [pl.BlockSpec(a.shape, lambda i: (0, 0)) for a in flat]
    out_spec = pl.BlockSpec((1, 1, tile_b), lambda i: (i, 0, 0))

    out = pl.pallas_call(
        make_classifier_kernel(num_fc_layers, tile_b),
        out_shape=jax.ShapeDtypeStruct((num_tiles, 1, tile_b), jnp.float32),
        grid_spec=pltpu.PrefetchScalarGridSpec(
            num_scalar_prefetch=0,
            grid=grid,
            in_specs=[x_spec] + param_specs,
            out_specs=out_spec,
        ),
        compiler_params=pltpu.CompilerParams(
            dimension_semantics=("parallel",),   # shards grid across v7x's 2 TCs
            vmem_limit_bytes=32 * 1024 * 1024,   # safe on v5e/v6e/v7x
        ),
    )(x, *flat)

    # (num_tiles, 1, tile_b) -> (padded, 1) -> slice valid rows.
    return out.reshape(padded, 1)[:batch]


# ----------------------------------------------------------------------------
# Encoder stand-ins (plain JAX glue)
# ----------------------------------------------------------------------------
def semantic_encoder(tok_fw, tok_rc, emb_table):
    # TODO(synk): real SemanticEncoder is an external BERT; stand-in only.
    def enc(tok):
        e = jnp.take(emb_table, tok, axis=0)        # (N, T, H)
        return jnp.mean(e, axis=1)                  # (N, H)

    return enc(tok_fw), enc(tok_rc)


def aln_encoder(tok_fw, tok_rc, emb_table, proj_w, proj_b):
    # TODO(synk): real AlignmentEncoder is an external bi-LSTM; stand-in only.
    def enc(tok):
        e = jnp.mean(jnp.take(emb_table, tok, axis=0), axis=1)  # (N, E)
        return jnp.tanh(e @ proj_w + proj_b)                    # (N, H)

    return enc(tok_fw), enc(tok_rc)


# ----------------------------------------------------------------------------
# Full SeqCls forward
# ----------------------------------------------------------------------------
def seqcls_forward(in_fw_sem, in_rc_sem, in_fw_aln, in_rc_aln, params, cfg):
    batch = in_fw_sem.shape[0]
    split = cfg["split"]
    concat = cfg["bert_hidden"] + cfg["aln_hidden"]

    # view(split*batch, num_tokens)
    fw_sem = in_fw_sem.reshape(split * batch, cfg["bert_tokens"])
    rc_sem = in_rc_sem.reshape(split * batch, cfg["bert_tokens"])
    fw_aln = in_fw_aln.reshape(split * batch, cfg["aln_tokens"])
    rc_aln = in_rc_aln.reshape(split * batch, cfg["aln_tokens"])

    bert_fw, bert_rc = semantic_encoder(fw_sem, rc_sem, params["bert_emb"])
    aln_fw, aln_rc = aln_encoder(
        fw_aln, rc_aln, params["aln_emb"], params["aln_proj_w"], params["aln_proj_b"]
    )

    # Lane-dense (batch, split*concat) f32 embeddings, feature-last.
    embed_fw = jnp.concatenate([bert_fw, aln_fw], axis=1).reshape(
        batch, split * concat
    )
    embed_rc = jnp.concatenate([bert_rc, aln_rc], axis=1).reshape(
        batch, split * concat
    )

    # hot path: classifier MLP on fw & rc + average, inside the Pallas kernel
    probs = pallas_classifier(embed_fw, embed_rc, params["clf"], cfg["fc_units"])
    return probs


# ----------------------------------------------------------------------------
# Main
# ----------------------------------------------------------------------------
if __name__ == "__main__":
    # Small synthetic config (implied by the module's __init__)
    k = 3
    maxseqlen = 16
    split = 2                       # classifier input is 2 * concat_features
    bert_hidden = 32
    aln_hidden = 32
    aln_embed = 16
    fc_units = [64, 32]

    bert_vocab = 4 ** k + 3         # 67
    aln_vocab = 4 ** k + 1          # 65
    bert_tokens = maxseqlen - k + 2  # 15
    aln_tokens = maxseqlen - k + 1   # 14
    batch = 2

    cfg = dict(
        split=split,
        bert_hidden=bert_hidden,
        aln_hidden=aln_hidden,
        bert_tokens=bert_tokens,
        aln_tokens=aln_tokens,
        fc_units=fc_units,
    )

    key = jax.random.PRNGKey(0)
    keys = jax.random.split(key, 20)

    # Deterministic token inputs
    in_fw_sem = jax.random.randint(keys[0], (batch, split * bert_tokens), 0, bert_vocab)
    in_rc_sem = jax.random.randint(keys[1], (batch, split * bert_tokens), 0, bert_vocab)
    in_fw_aln = jax.random.randint(keys[2], (batch, split * aln_tokens), 0, aln_vocab)
    in_rc_aln = jax.random.randint(keys[3], (batch, split * aln_tokens), 0, aln_vocab)

    # Deterministic parameters (synthetic; no checkpoint load)
    bert_emb = 0.02 * jax.random.normal(keys[4], (bert_vocab, bert_hidden), jnp.float32)
    aln_emb = 0.02 * jax.random.normal(keys[5], (aln_vocab, aln_embed), jnp.float32)
    aln_proj_w = 0.1 * jax.random.normal(keys[6], (aln_embed, aln_hidden), jnp.float32)
    aln_proj_b = jnp.zeros((aln_hidden,), jnp.float32)

    concat_features = bert_hidden + aln_hidden
    dims = [2 * concat_features] + fc_units         # [128, 64, 32]
    layers = []
    for i in range(len(fc_units)):
        d_in, d_out = dims[i], dims[i + 1]
        w = 0.05 * jax.random.normal(keys[7 + 2 * i], (d_in, d_out), jnp.float32)
        b = jnp.zeros((1, d_out), jnp.float32)
        gamma = jnp.ones((1, d_out), jnp.float32)
        beta = jnp.zeros((1, d_out), jnp.float32)
        layers.append((w, b, gamma, beta))
    logits_w = 0.05 * jax.random.normal(keys[15], (fc_units[-1], 1), jnp.float32)
    logits_b = jnp.zeros((1, 1), jnp.float32)

    params = dict(
        bert_emb=bert_emb,
        aln_emb=aln_emb,
        aln_proj_w=aln_proj_w,
        aln_proj_b=aln_proj_b,
        clf=dict(layers=layers, logits_w=logits_w, logits_b=logits_b),
    )

    probs = seqcls_forward(in_fw_sem, in_rc_sem, in_fw_aln, in_rc_aln, params, cfg)
    probs = jax.block_until_ready(probs)
    assert probs.shape == (batch, 1)
    assert bool(jnp.all(jnp.isfinite(probs)))
    assert bool(jnp.all((probs >= 0.0) & (probs <= 1.0)))
    print("KERNEL_OK")
</pallas_src>

<mosaic_0001>
module attributes {stable_mosaic.version = 11 : i64} {
  func.func @kernel(%arg0: i32, %arg1: memref<1x256x128xbf16, #tpu.memory_space<vmem>>, %arg2: memref<128x64xbf16, #tpu.memory_space<vmem>>, %arg3: memref<1x64xf32, #tpu.memory_space<vmem>>, %arg4: memref<1x64xf32, #tpu.memory_space<vmem>>, %arg5: memref<1x64xf32, #tpu.memory_space<vmem>>, %arg6: memref<64x32xbf16, #tpu.memory_space<vmem>>, %arg7: memref<1x32xf32, #tpu.memory_space<vmem>>, %arg8: memref<1x32xf32, #tpu.memory_space<vmem>>, %arg9: memref<1x32xf32, #tpu.memory_space<vmem>>, %arg10: memref<8x32xf32, #tpu.memory_space<vmem>>, %arg11: memref<1x1xf32, #tpu.memory_space<vmem>>, %arg12: memref<1x1x128xf32, #tpu.memory_space<vmem>>) attributes {dimension_semantics = [#tpu.dimension_semantics<parallel>], iteration_bounds = array<i64: 1>, scalar_prefetch = 0 : i64, scratch_operands = 0 : i64, tpu.core_type = #tpu.core_type<tc>, window_params = [{transform_indices = @transform_0, window_bounds = array<i64: 1, 256, 128>}, {pipeline_mode = #tpu.pipeline_mode<synchronous>, transform_indices = @transform_1, window_bounds = array<i64: 128, 64>}, {pipeline_mode = #tpu.pipeline_mode<synchronous>, transform_indices = @transform_2, window_bounds = array<i64: 1, 64>}, {pipeline_mode = #tpu.pipeline_mode<synchronous>, transform_indices = @transform_3, window_bounds = array<i64: 1, 64>}, {pipeline_mode = #tpu.pipeline_mode<synchronous>, transform_indices = @transform_4, window_bounds = array<i64: 1, 64>}, {pipeline_mode = #tpu.pipeline_mode<synchronous>, transform_indices = @transform_5, window_bounds = array<i64: 64, 32>}, {pipeline_mode = #tpu.pipeline_mode<synchronous>, transform_indices = @transform_6, window_bounds = array<i64: 1, 32>}, {pipeline_mode = #tpu.pipeline_mode<synchronous>, transform_indices = @transform_7, window_bounds = array<i64: 1, 32>}, {pipeline_mode = #tpu.pipeline_mode<synchronous>, transform_indices = @transform_8, window_bounds = array<i64: 1, 32>}, {pipeline_mode = #tpu.pipeline_mode<synchronous>, transform_indices = @transform_9, window_bounds = array<i64: 8, 32>}, {pipeline_mode = #tpu.pipeline_mode<synchronous>, transform_indices = @transform_10, window_bounds = array<i64: 1, 1>}, {transform_indices = @transform_11, window_bounds = array<i64: 1, 1, 128>}]} {
    %c0 = arith.constant 0 : index
    %c0_0 = arith.constant 0 : index
    %c0_1 = arith.constant 0 : index
    %0 = vector.load %arg1[%c0, %c0_0, %c0_1] : memref<1x256x128xbf16, #tpu.memory_space<vmem>>, vector<1x256x128xbf16>
    %1 = vector.shape_cast %0 : vector<1x256x128xbf16> to vector<256x128xbf16>
    %c0_2 = arith.constant 0 : index
    %c0_3 = arith.constant 0 : index
    %2 = vector.load %arg2[%c0_2, %c0_3] : memref<128x64xbf16, #tpu.memory_space<vmem>>, vector<128x64xbf16>
    %c0_4 = arith.constant 0 : index
    %c0_5 = arith.constant 0 : index
    %3 = vector.load %arg3[%c0_4, %c0_5] : memref<1x64xf32, #tpu.memory_space<vmem>>, vector<1x64xf32>
    %c0_6 = arith.constant 0 : index
    %c0_7 = arith.constant 0 : index
    %4 = vector.load %arg4[%c0_6, %c0_7] : memref<1x64xf32, #tpu.memory_space<vmem>>, vector<1x64xf32>
    %c0_8 = arith.constant 0 : index
    %c0_9 = arith.constant 0 : index
    %5 = vector.load %arg5[%c0_8, %c0_9] : memref<1x64xf32, #tpu.memory_space<vmem>>, vector<1x64xf32>
    %cst = arith.constant dense<0.000000e+00> : vector<256x64xf32>
    %6 = tpu.matmul %1, %2, %cst {dimension_numbers = #tpu.dot_dimension_numbers<[1], [0], [0], [1], [0, 0, 1, 1], [], []>} : vector<256x128xbf16>, vector<128x64xbf16>, vector<256x64xf32> -> vector<256x64xf32>
    %7 = vector.broadcast %3 : vector<1x64xf32> to vector<256x64xf32>
    %8 = arith.addf %6, %7 : vector<256x64xf32>
    %cst_10 = arith.constant dense<0.000000e+00> : vector<256xf32>
    %9 = vector.multi_reduction <add>, %8, %cst_10 [1] : vector<256x64xf32> to vector<256xf32>
    %10 = vector.shape_cast %9 : vector<256xf32> to vector<256x1xf32>
    %cst_11 = arith.constant 6.400000e+01 : f32
    %11 = vector.broadcast %cst_11 : f32 to vector<256x1xf32>
    %12 = arith.divf %10, %11 : vector<256x1xf32>
    %13 = vector.broadcast %12 : vector<256x1xf32> to vector<256x64xf32>
    %14 = arith.subf %8, %13 : vector<256x64xf32>
    %15 = arith.mulf %14, %14 : vector<256x64xf32>
    %cst_12 = arith.constant dense<0.000000e+00> : vector<256xf32>
    %16 = vector.multi_reduction <add>, %15, %cst_12 [1] : vector<256x64xf32> to vector<256xf32>
    %17 = vector.shape_cast %16 : vector<256xf32> to vector<256x1xf32>
    %cst_13 = arith.constant 6.400000e+01 : f32
    %18 = vector.broadcast %cst_13 : f32 to vector<256x1xf32>
    %19 = arith.divf %17, %18 : vector<256x1xf32>
    %20 = vector.broadcast %12 : vector<256x1xf32> to vector<256x64xf32>
    %21 = arith.subf %8, %20 : vector<256x64xf32>
    %cst_14 = arith.constant 9.99999974E-6 : f32
    %22 = vector.broadcast %cst_14 : f32 to vector<256x1xf32>
    %23 = arith.addf %19, %22 : vector<256x1xf32>
    %24 = math.rsqrt %23 : vector<256x1xf32>
    %25 = vector.broadcast %24 : vector<256x1xf32> to vector<256x64xf32>
    %26 = arith.mulf %21, %25 : vector<256x64xf32>
    %27 = vector.broadcast %4 : vector<1x64xf32> to vector<256x64xf32>
    %28 = arith.mulf %26, %27 : vector<256x64xf32>
    %29 = vector.broadcast %5 : vector<1x64xf32> to vector<256x64xf32>
    %30 = arith.addf %28, %29 : vector<256x64xf32>
    %cst_15 = arith.constant 0.000000e+00 : f32
    %31 = vector.broadcast %cst_15 : f32 to vector<256x64xf32>
    %32 = arith.maximumf %30, %31 : vector<256x64xf32>
    %33 = arith.truncf %32 : vector<256x64xf32> to vector<256x64xbf16>
    %c0_16 = arith.constant 0 : index
    %c0_17 = arith.constant 0 : index
    %34 = vector.load %arg6[%c0_16, %c0_17] : memref<64x32xbf16, #tpu.memory_space<vmem>>, vector<64x32xbf16>
    %c0_18 = arith.constant 0 : index
    %c0_19 = arith.constant 0 : index
    %35 = vector.load %arg7[%c0_18, %c0_19] : memref<1x32xf32, #tpu.memory_space<vmem>>, vector<1x32xf32>
    %c0_20 = arith.constant 0 : index
    %c0_21 = arith.constant 0 : index
    %36 = vector.load %arg8[%c0_20, %c0_21] : memref<1x32xf32, #tpu.memory_space<vmem>>, vector<1x32xf32>
    %c0_22 = arith.constant 0 : index
    %c0_23 = arith.constant 0 : index
    %37 = vector.load %arg9[%c0_22, %c0_23] : memref<1x32xf32, #tpu.memory_space<vmem>>, vector<1x32xf32>
    %cst_24 = arith.constant dense<0.000000e+00> : vector<256x32xf32>
    %38 = tpu.matmul %33, %34, %cst_24 {dimension_numbers = #tpu.dot_dimension_numbers<[1], [0], [0], [1], [0, 0, 1, 1], [], []>} : vector<256x64xbf16>, vector<64x32xbf16>, vector<256x32xf32> -> vector<256x32xf32>
    %39 = vector.broadcast %35 : vector<1x32xf32> to vector<256x32xf32>
    %40 = arith.addf %38, %39 : vector<256x32xf32>
    %cst_25 = arith.constant dense<0.000000e+00> : vector<256xf32>
    %41 = vector.multi_reduction <add>, %40, %cst_25 [1] : vector<256x32xf32> to vector<256xf32>
    %42 = vector.shape_cast %41 : vector<256xf32> to vector<256x1xf32>
    %cst_26 = arith.constant 3.200000e+01 : f32
    %43 = vector.broadcast %cst_26 : f32 to vector<256x1xf32>
    %44 = arith.divf %42, %43 : vector<256x1xf32>
    %45 = vector.broadcast %44 : vector<256x1xf32> to vector<256x32xf32>
    %46 = arith.subf %40, %45 : vector<256x32xf32>
    %47 = arith.mulf %46, %46 : vector<256x32xf32>
    %cst_27 = arith.constant dense<0.000000e+00> : vector<256xf32>
    %48 = vector.multi_reduction <add>, %47, %cst_27 [1] : vector<256x32xf32> to vector<256xf32>
    %49 = vector.shape_cast %48 : vector<256xf32> to vector<256x1xf32>
    %cst_28 = arith.constant 3.200000e+01 : f32
    %50 = vector.broadcast %cst_28 : f32 to vector<256x1xf32>
    %51 = arith.divf %49, %50 : vector<256x1xf32>
    %52 = vector.broadcast %44 : vector<256x1xf32> to vector<256x32xf32>
    %53 = arith.subf %40, %52 : vector<256x32xf32>
    %cst_29 = arith.constant 9.99999974E-6 : f32
    %54 = vector.broadcast %cst_29 : f32 to vector<256x1xf32>
    %55 = arith.addf %51, %54 : vector<256x1xf32>
    %56 = math.rsqrt %55 : vector<256x1xf32>
    %57 = vector.broadcast %56 : vector<256x1xf32> to vector<256x32xf32>
    %58 = arith.mulf %53, %57 : vector<256x32xf32>
    %59 = vector.broadcast %36 : vector<1x32xf32> to vector<256x32xf32>
    %60 = arith.mulf %58, %59 : vector<256x32xf32>
    %61 = vector.broadcast %37 : vector<1x32xf32> to vector<256x32xf32>
    %62 = arith.addf %60, %61 : vector<256x32xf32>
    %cst_30 = arith.constant 0.000000e+00 : f32
    %63 = vector.broadcast %cst_30 : f32 to vector<256x32xf32>
    %64 = arith.maximumf %62, %63 : vector<256x32xf32>
    %c0_31 = arith.constant 0 : index
    %c0_32 = arith.constant 0 : index
    %65 = vector.load %arg10[%c0_31, %c0_32] : memref<8x32xf32, #tpu.memory_space<vmem>>, vector<8x32xf32>
    %c0_33 = arith.constant 0 : index
    %c0_34 = arith.constant 0 : index
    %66 = vector.load %arg11[%c0_33, %c0_34] : memref<1x1xf32, #tpu.memory_space<vmem>>, vector<1x1xf32>
    "tpu.trace_start"() <{level = 10 : i32, message = "od,nd->on"}> : () -> ()
    %cst_35 = arith.constant dense<0.000000e+00> : vector<8x256xf32>
    %67 = tpu.matmul %65, %64, %cst_35 {dimension_numbers = #tpu.dot_dimension_numbers<[1], [1], [0], [0], [0, 0, 1, 0], [], []>} : vector<8x32xf32>, vector<256x32xf32>, vector<8x256xf32> -> vector<8x256xf32>
    "tpu.trace_stop"() : () -> ()
    %68 = vector.extract_strided_slice %67 {offsets = [0, 0], sizes = [1, 256], strides = [1, 1]} : vector<8x256xf32> to vector<1x256xf32>
    %69 = vector.broadcast %66 : vector<1x1xf32> to vector<1x256xf32>
    %70 = arith.addf %68, %69 : vector<1x256xf32>
    %71 = arith.negf %70 : vector<1x256xf32>
    %72 = math.exp %71 : vector<1x256xf32>
    %cst_36 = arith.constant 1.000000e+00 : f32
    %73 = vector.broadcast %cst_36 : f32 to vector<1x256xf32>
    %74 = arith.addf %73, %72 : vector<1x256xf32>
    %75 = arith.divf %73, %74 : vector<1x256xf32>
    %76 = vector.extract_strided_slice %75 {offsets = [0, 0], sizes = [1, 128], strides = [1, 1]} : vector<1x256xf32> to vector<1x128xf32>
    %77 = vector.extract_strided_slice %75 {offsets = [0, 128], sizes = [1, 128], strides = [1, 1]} : vector<1x256xf32> to vector<1x128xf32>
    %78 = arith.addf %76, %77 : vector<1x128xf32>
    %cst_37 = arith.constant 5.000000e-01 : f32
    %79 = vector.broadcast %cst_37 : f32 to vector<1x128xf32>
    %80 = arith.mulf %79, %78 : vector<1x128xf32>
    %c0_38 = arith.constant 0 : index
    %c0_39 = arith.constant 0 : index
    %c0_40 = arith.constant 0 : index
    %81 = vector.load %arg12[%c0_38, %c0_39, %c0_40] : memref<1x1x128xf32, #tpu.memory_space<vmem>>, vector<1x1x128xf32>
    %82 = vector.shape_cast %81 : vector<1x1x128xf32> to vector<1x128xf32>
    %83 = vector.shape_cast %80 : vector<1x128xf32> to vector<1x1x128xf32>
    tpu.vector_store %arg12[%c0_38, %c0_39, %c0_40], %83 {strides = array<i32>} : memref<1x1x128xf32, #tpu.memory_space<vmem>>, vector<1x1x128xf32>,
    return
  }
  func.func @transform_0(%arg0: i32) -> (i32, i32, i32) {
    %c0_i32 = arith.constant 0 : i32
    %c0_i32_0 = arith.constant 0 : i32
    %c0_i32_1 = arith.constant 0 : i32
    return %arg0, %c0_i32, %c0_i32_0 : i32, i32, i32
  }
  func.func @transform_1(%arg0: i32) -> (i32, i32) {
    %c0_i32 = arith.constant 0 : i32
    %c0_i32_0 = arith.constant 0 : i32
    %c0_i32_1 = arith.constant 0 : i32
    return %c0_i32, %c0_i32_0 : i32, i32
  }
  func.func @transform_2(%arg0: i32) -> (i32, i32) {
    %c0_i32 = arith.constant 0 : i32
    %c0_i32_0 = arith.constant 0 : i32
    %c0_i32_1 = arith.constant 0 : i32
    return %c0_i32, %c0_i32_0 : i32, i32
  }
  func.func @transform_3(%arg0: i32) -> (i32, i32) {
    %c0_i32 = arith.constant 0 : i32
    %c0_i32_0 = arith.constant 0 : i32
    %c0_i32_1 = arith.constant 0 : i32
    return %c0_i32, %c0_i32_0 : i32, i32
  }
  func.func @transform_4(%arg0: i32) -> (i32, i32) {
    %c0_i32 = arith.constant 0 : i32
    %c0_i32_0 = arith.constant 0 : i32
    %c0_i32_1 = arith.constant 0 : i32
    return %c0_i32, %c0_i32_0 : i32, i32
  }
  func.func @transform_5(%arg0: i32) -> (i32, i32) {
    %c0_i32 = arith.constant 0 : i32
    %c0_i32_0 = arith.constant 0 : i32
    %c0_i32_1 = arith.constant 0 : i32
    return %c0_i32, %c0_i32_0 : i32, i32
  }
  func.func @transform_6(%arg0: i32) -> (i32, i32) {
    %c0_i32 = arith.constant 0 : i32
    %c0_i32_0 = arith.constant 0 : i32
    %c0_i32_1 = arith.constant 0 : i32
    return %c0_i32, %c0_i32_0 : i32, i32
  }
  func.func @transform_7(%arg0: i32) -> (i32, i32) {
    %c0_i32 = arith.constant 0 : i32
    %c0_i32_0 = arith.constant 0 : i32
    %c0_i32_1 = arith.constant 0 : i32
    return %c0_i32, %c0_i32_0 : i32, i32
  }
  func.func @transform_8(%arg0: i32) -> (i32, i32) {
    %c0_i32 = arith.constant 0 : i32
    %c0_i32_0 = arith.constant 0 : i32
    %c0_i32_1 = arith.constant 0 : i32
    return %c0_i32, %c0_i32_0 : i32, i32
  }
  func.func @transform_9(%arg0: i32) -> (i32, i32) {
    %c0_i32 = arith.constant 0 : i32
    %c0_i32_0 = arith.constant 0 : i32
    %c0_i32_1 = arith.constant 0 : i32
    return %c0_i32, %c0_i32_0 : i32, i32
  }
  func.func @transform_10(%arg0: i32) -> (i32, i32) {
    %c0_i32 = arith.constant 0 : i32
    %c0_i32_0 = arith.constant 0 : i32
    %c0_i32_1 = arith.constant 0 : i32
    return %c0_i32, %c0_i32_0 : i32, i32
  }
  func.func @transform_11(%arg0: i32) -> (i32, i32, i32) {
    %c0_i32 = arith.constant 0 : i32
    %c0_i32_0 = arith.constant 0 : i32
    %c0_i32_1 = arith.constant 0 : i32
    return %arg0, %c0_i32, %c0_i32_0 : i32, i32, i32
  }
}

</mosaic_0001>

<bundles_post_ra>
// kernel: tpu_custom_call.1
= control target key start
LH: loop header
LB: loop body
LE: loop exit
PB: predicated region body
PF: predicated region fallthrough
CT: control target
= control target key end

     0   :  { %s3604_s0 = inlined_call_operand.vmem [shape: bf16[1,256,128], index: 0, kind: input, shape index: {}]   ;;  %s3605_s1 = inlined_call_operand.vmem [shape: bf16[128,64], index: 1, kind: input, shape index: {}]   ;;  %s3606_s2 = inlined_call_operand.vmem [shape: f32[1,64], index: 2, kind: input, shape index: {}]   ;;  %s3607_s3 = inlined_call_operand.vmem [shape: f32[1,64], index: 3, kind: input, shape index: {}]   ;;  %s3608_s4 = inlined_call_operand.vmem [shape: f32[1,64], index: 4, kind: input, shape index: {}]   ;;  %s3609_s5 = inlined_call_operand.vmem [shape: bf16[64,32], index: 5, kind: input, shape index: {}]   ;;  %s3610_s6 = inlined_call_operand.vmem [shape: f32[1,32], index: 6, kind: input, shape index: {}]   ;;  %s3611_s7 = inlined_call_operand.vmem [shape: f32[1,32], index: 7, kind: input, shape index: {}]   ;;  %s3612_s8 = inlined_call_operand.vmem [shape: f32[1,32], index: 8, kind: input, shape index: {}]   ;;  %s3613_s9 = inlined_call_operand.vmem [shape: f32[8,32], index: 9, kind: input, shape index: {}]   ;;  %s3614_s10 = inlined_call_operand.<no memory space> [shape: f32[1,1], index: 10, kind: input, shape index: {}]   ;;  %s3615_s11 = inlined_call_operand.hbm [shape: f32[1,1,128], index: 11, kind: output, shape index: {}]  }
   0x1   :  { %v16_v0 = vstv %s3614_s10 }
   0x2   :  { %17 = vst [vmem:[#allocation2] sm:$0x1] %v16_v0 }
   0x3   :  { %v2236_v1 = vld [vmem:[%s3605_s1] sm:$0xff]   ;;  %v2237_v2 = vld [vmem:[%s3605_s1 + $0x8] sm:$0xff]   ;;  %v2238_v3 = vld [vmem:[%s3605_s1 + $0x10] sm:$0xff]  }
   0x4   :  { %2097 = vmatprep.subr.bf16.mxu0 %v2236_v1  ;;  %v2239_v4 = vld [vmem:[%s3605_s1 + $0x18] sm:$0xff]   ;;  %v2244_v5 = vld [vmem:[%s3604_s0] sm:$0xff]   ;;  %v2241_v7 = vld [vmem:[%s3605_s1 + $0x28] sm:$0xff]  }
   0x5   :  { %2098 = vmatpush3.bf16.msra.mxu0 %v2236_v1  ;;  %2113 = vmatprep.mubr.bf16.mxu0 %v2244_v5  ;;  %v2240_v6 = vld [vmem:[%s3605_s1 + $0x20] sm:$0xff]   ;;  %v2242_v8 = vld [vmem:[%s3605_s1 + $0x30] sm:$0xff]   ;;  %v2243_v9 = vld [vmem:[%s3605_s1 + $0x38] sm:$0xff]  }
   0x6   :  { %2099 = vmatprep.subr.bf16.mxu0 %v2237_v2 }
   0x9   :  { %2100 = vmatpush3.bf16.msra.mxu0 %v2237_v2 }
   0xa   :  { %2101 = vmatprep.subr.bf16.mxu0 %v2238_v3 }
   0xd   :  { %2102 = vmatpush3.bf16.msra.mxu0 %v2238_v3 }
   0xe   :  { %2103 = vmatprep.subr.bf16.mxu0 %v2239_v4 }
  0x11   :  { %2104 = vmatpush3.bf16.msra.mxu0 %v2239_v4 }
  0x12   :  { %2105 = vmatprep.subr.bf16.mxu0 %v2240_v6 }
  0x15   :  { %2106 = vmatpush3.bf16.msra.mxu0 %v2240_v6 }
  0x16   :  { %2107 = vmatprep.subr.bf16.mxu0 %v2241_v7 }
  0x19   :  { %2108 = vmatpush3.bf16.msra.mxu0 %v2241_v7 }
  0x1a   :  { %2109 = vmatprep.subr.bf16.mxu0 %v2242_v8 }
  0x1b   :  { %18 = vsyncpa [#allocation4], 0  ;;  %v2245_v10 = vld [vmem:[%s3604_s0 + $0x8] sm:$0xff]   ;;  %v2246_v11 = vld [vmem:[%s3604_s0 + $0x10] sm:$0xff]   ;;  %vm404_vm0 = vcmask 523264   ;;  %vm1196_vm1 = vcmask 261120  }
  0x1c   :  { %v2247_v12 = vld [vmem:[%s3604_s0 + $0x18] sm:$0xff]   ;;  %v2248_v13 = vld [vmem:[%s3604_s0 + $0x20] sm:$0xff]   ;;  %v2249_v14 = vld [vmem:[%s3604_s0 + $0x28] sm:$0xff]  }
  0x1d   :  { %2110 = vmatpush3.bf16.msra.mxu0 %v2242_v8  ;;  %v2250_v15 = vld [vmem:[%s3604_s0 + $0x30] sm:$0xff]   ;;  %v2251_v16 = vld [vmem:[%s3604_s0 + $0x38] sm:$0xff]   ;;  %v2252_v17 = vld [vmem:[%s3604_s0 + $0x40] sm:$0xff]  }
  0x1e   :  { %2111 = vmatprep.subr.bf16.mxu0 %v2243_v9  ;;  %v2253_v18 = vld [vmem:[%s3604_s0 + $0x48] sm:$0xff]   ;;  %v2254_v19 = vld [vmem:[%s3604_s0 + $0x50] sm:$0xff]   ;;  %v2255_v20 = vld [vmem:[%s3604_s0 + $0x58] sm:$0xff]  }
  0x1f   :  { %v2256_v21 = vld [vmem:[%s3604_s0 + $0x60] sm:$0xff]   ;;  %v2257_v22 = vld [vmem:[%s3604_s0 + $0x68] sm:$0xff]   ;;  %v2258_v23 = vld [vmem:[%s3604_s0 + $0x70] sm:$0xff]  }
  0x20   :  { %v2259_v24 = vld [vmem:[%s3604_s0 + $0x78] sm:$0xff]   ;;  %v2564_v25 = vld [vmem:[%s3606_s2] ss:$0 sm:$0xff]  ;;  %vm3463_vm2 = vmpackc.low %vm1196_vm1, %vm1196_vm1 }
  0x21   :  { %2112 = vmatpush3.bf16.msra.mxu0 %v2243_v9 }
  0x24   :  { %2114 = vmatmul.mubr.bf16.vlgmr.msra.gmra.mrb[0].mxu0 %v2245_v10 }
  0x25   :  { %2117 = vmatprep.mubr.bf16.mxu0 %v2246_v11 }
  0x2c   :  { %2118 = vmatmul.mubr.bf16.gmra.mrb[4].mxu0 %v2247_v12 }
  0x2d   :  { %2121 = vmatprep.mubr.bf16.mxu0 %v2248_v13 }
  0x34   :  { %2122 = vmatmul.mubr.bf16.gmra.mrb[8].mxu0 %v2249_v14 }
  0x35   :  { %2125 = vmatprep.mubr.bf16.mxu0 %v2250_v15 }
  0x3c   :  { %2126 = vmatmul.mubr.bf16.gmra.mrb[12].mxu0 %v2251_v16 }
  0x3d   :  { %2129 = vmatprep.mubr.bf16.mxu0 %v2252_v17 }
  0x44   :  { %2130 = vmatmul.mubr.bf16.gmra.mrb[16].mxu0 %v2253_v18 }
  0x45   :  { %2133 = vmatprep.mubr.bf16.mxu0 %v2254_v19 }
  0x4c   :  { %2134 = vmatmul.mubr.bf16.gmra.mrb[20].mxu0 %v2255_v20 }
  0x4d   :  { %2137 = vmatprep.mubr.bf16.mxu0 %v2256_v21 }
  0x54   :  { %2138 = vmatmul.mubr.bf16.gmra.mrb[24].mxu0 %v2257_v22 }
  0x55   :  { %2141 = vmatprep.mubr.bf16.mxu0 %v2258_v23 }
  0x5c   :  { %2142 = vmatmul.mubr.bf16.gmra.mrb[28].mxu0 %v2259_v24 }
  0xf7   :  { %v2115_v26 = vpop.f32.mrb[0].mxu0 }
  0xf8   :  { %v2567_v27 = vadd.f32 %v2115_v26, %v2564_v25  ;;  %v277_v28 = vpop.f32.mrb[1].mxu0 }
  0xf9   :  { %v2570_v29 = vadd.f32 %v2564_v25, %v277_v28  ;;  %v2116_v30 = vpop.f32.mrb[2].mxu0 }
  0xfa   :  { %v2573_v31 = vadd.f32 %v2116_v30, %v2564_v25  ;;  %v280_v32 = vpop.f32.mrb[3].mxu0  ;;  %v411_v33 = vsel %vm404_vm0, %v2567_v27, 0.0 }
  0xfb   :  { %v2578_v34 = vadd.f32 %v2564_v25, %v280_v32  ;;  %412 = vadd.xlane.f32.xlu1 %v411_v33  ;;  %v405_v35 = vsel %vm404_vm0, %v2570_v29, 0.0 }
  0xfc   :  { %406 = vadd.xlane.f32.xlu0 %v405_v35  ;;  %v414_v36 = vsel %vm404_vm0, %v2573_v31, 0.0 }
  0xfd   :  { %v408_v38 = vsel %vm404_vm0, %v2578_v34, 0.0 }
  0xff   :  { %415 = vadd.xlane.f32.xlu1 %v414_v36  ;;  %v2119_v37 = vpop.f32.mrb[4].mxu0 }
 0x100   :  { %v293_v39 = vpop.f32.mrb[5].mxu0  ;;  %409 = vadd.xlane.f32.xlu0 %v408_v38  ;;  %v2587_v40 = vadd.f32 %v2119_v37, %v2564_v25 }
 0x101   :  { %v2590_v41 = vadd.f32 %v2564_v25, %v293_v39  ;;  %v2120_v42 = vpop.f32.mrb[6].mxu0 }
 0x102   :  { %v296_v43 = vpop.f32.mrb[7].mxu0  ;;  %v2593_v44 = vadd.f32 %v2120_v42, %v2564_v25  ;;  %v423_v48 = vsel %vm404_vm0, %v2587_v40, 0.0 }
 0x103   :  { %v2596_v45 = vadd.f32 %v2564_v25, %v296_v43  ;;  %v417_v46 = vsel %vm404_vm0, %v2590_v41, 0.0 }
 0x104   :  { %418 = vadd.xlane.f32.xlu0 %v417_v46  ;;  %v426_v50 = vsel %vm404_vm0, %v2593_v44, 0.0 }
 0x105   :  { %v420_v47 = vsel %vm404_vm0, %v2596_v45, 0.0 }
 0x106   :  { %421 = vadd.xlane.f32.xlu1 %v420_v47 }
 0x107   :  { %v2123_v49 = vpop.f32.mrb[8].mxu0 }
 0x108   :  { %v309_v51 = vpop.f32.mrb[9].mxu0  ;;  %424 = vadd.xlane.f32.xlu0 %v423_v48  ;;  %v2607_v52 = vadd.f32 %v2123_v49, %v2564_v25 }
 0x109   :  { %v2610_v53 = vadd.f32 %v2564_v25, %v309_v51  ;;  %v2124_v54 = vpop.f32.mrb[10].mxu0 }
 0x10a   :  { %v312_v55 = vpop.f32.mrb[11].mxu0  ;;  %427 = vadd.xlane.f32.xlu1 %v426_v50  ;;  %v2613_v56 = vadd.f32 %v2124_v54, %v2564_v25  ;;  %v435_v60 = vsel %vm404_vm0, %v2607_v52, 0.0 }
 0x10b   :  { %v2616_v57 = vadd.f32 %v2564_v25, %v312_v55  ;;  %v429_v58 = vsel %vm404_vm0, %v2610_v53, 0.0 }
 0x10c   :  { %430 = vadd.xlane.f32.xlu0 %v429_v58  ;;  %v438_v62 = vsel %vm404_vm0, %v2613_v56, 0.0 }
 0x10d   :  { %v432_v59 = vsel %vm404_vm0, %v2616_v57, 0.0 }
 0x10e   :  { %433 = vadd.xlane.f32.xlu1 %v432_v59 }
 0x10f   :  { %v2127_v61 = vpop.f32.mrb[12].mxu0 }
 0x110   :  { %v325_v63 = vpop.f32.mrb[13].mxu0  ;;  %436 = vadd.xlane.f32.xlu0 %v435_v60  ;;  %v2627_v0 = vadd.f32 %v2127_v61, %v2564_v25 }
 0x111   :  { %v2630_v1 = vadd.f32 %v2564_v25, %v325_v63  ;;  %v2128_v2 = vpop.f32.mrb[14].mxu0 }
 0x112   :  { %v328_v3 = vpop.f32.mrb[15].mxu0  ;;  %439 = vadd.xlane.f32.xlu1 %v438_v62  ;;  %v2633_v4 = vadd.f32 %v2128_v2, %v2564_v25  ;;  %v447_v8 = vsel %vm404_vm0, %v2627_v0, 0.0 }
 0x113   :  { %v2636_v5 = vadd.f32 %v2564_v25, %v328_v3  ;;  %v441_v6 = vsel %vm404_vm0, %v2630_v1, 0.0 }
 0x114   :  { %442 = vadd.xlane.f32.xlu0 %v441_v6  ;;  %v450_v10 = vsel %vm404_vm0, %v2633_v4, 0.0 }
 0x115   :  { %v444_v7 = vsel %vm404_vm0, %v2636_v5, 0.0 }
 0x116   :  { %445 = vadd.xlane.f32.xlu1 %v444_v7 }
 0x117   :  { %v2131_v9 = vpop.f32.mrb[16].mxu0 }
 0x118   :  { %v341_v11 = vpop.f32.mrb[17].mxu0  ;;  %448 = vadd.xlane.f32.xlu0 %v447_v8  ;;  %v2647_v12 = vadd.f32 %v2131_v9, %v2564_v25 }
 0x119   :  { %v2650_v13 = vadd.f32 %v2564_v25, %v341_v11  ;;  %v2132_v14 = vpop.f32.mrb[18].mxu0 }
 0x11a   :  { %v344_v15 = vpop.f32.mrb[19].mxu0  ;;  %451 = vadd.xlane.f32.xlu1 %v450_v10  ;;  %v2653_v16 = vadd.f32 %v2132_v14, %v2564_v25  ;;  %v459_v20 = vsel %vm404_vm0, %v2647_v12, 0.0 }
 0x11b   :  { %v2656_v17 = vadd.f32 %v2564_v25, %v344_v15  ;;  %v453_v18 = vsel %vm404_vm0, %v2650_v13, 0.0 }
 0x11c   :  { %454 = vadd.xlane.f32.xlu0 %v453_v18  ;;  %v462_v22 = vsel %vm404_vm0, %v2653_v16, 0.0 }
 0x11d   :  { %v456_v19 = vsel %vm404_vm0, %v2656_v17, 0.0 }
 0x11e   :  { %457 = vadd.xlane.f32.xlu1 %v456_v19 }
 0x11f   :  { %v2135_v21 = vpop.f32.mrb[20].mxu0 }
 0x120   :  { %v357_v23 = vpop.f32.mrb[21].mxu0  ;;  %460 = vadd.xlane.f32.xlu0 %v459_v20  ;;  %v2667_v24 = vadd.f32 %v2135_v21, %v2564_v25 }
 0x121   :  { %v2670_v26 = vadd.f32 %v2564_v25, %v357_v23  ;;  %v2136_v28 = vpop.f32.mrb[22].mxu0 }
 0x122   :  { %v360_v30 = vpop.f32.mrb[23].mxu0  ;;  %463 = vadd.xlane.f32.xlu1 %v462_v22  ;;  %v2673_v32 = vadd.f32 %v2136_v28, %v2564_v25  ;;  %v471_v37 = vsel %vm404_vm0, %v2667_v24, 0.0 }
 0x123   :  { %v2676_v33 = vadd.f32 %v2564_v25, %v360_v30  ;;  %v465_v35 = vsel %vm404_vm0, %v2670_v26, 0.0 }
 0x124   :  { %466 = vadd.xlane.f32.xlu0 %v465_v35  ;;  %v474_v39 = vsel %vm404_vm0, %v2673_v32, 0.0 }
 0x125   :  { %v468_v36 = vsel %vm404_vm0, %v2676_v33, 0.0 }
 0x126   :  { %469 = vadd.xlane.f32.xlu1 %v468_v36 }
 0x127   :  { %v2139_v38 = vpop.f32.mrb[24].mxu0 }
 0x128   :  { %v2687_v42 = vadd.f32 %v2139_v38, %v2564_v25  ;;  %472 = vadd.xlane.f32.xlu0 %v471_v37  ;;  %v373_v43 = vpop.f32.mrb[25].mxu0 }
 0x129   :  { %v2690_v46 = vadd.f32 %v2564_v25, %v373_v43  ;;  %v2140_v47 = vpop.f32.mrb[26].mxu0 }
 0x12a   :  { %v2693_v48 = vadd.f32 %v2140_v47, %v2564_v25  ;;  %475 = vadd.xlane.f32.xlu1 %v474_v39  ;;  %v483_v49 = vsel %vm404_vm0, %v2687_v42, 0.0  ;;  %v376_v50 = vpop.f32.mrb[27].mxu0 }
 0x12b   :  { %v2698_v51 = vadd.f32 %v2564_v25, %v376_v50  ;;  %v477_v55 = vsel %vm404_vm0, %v2690_v46, 0.0 }
 0x12c   :  { %484 = vadd.xlane.f32.xlu0 %v483_v49  ;;  %v486_v54 = vsel %vm404_vm0, %v2693_v48, 0.0 }
 0x12d   :  { %v480_v59 = vsel %vm404_vm0, %v2698_v51, 0.0 }
 0x12e   :  { %487 = vadd.xlane.f32.xlu1 %v486_v54 }
 0x12f   :  { %v2143_v58 = vpop.f32.mrb[28].mxu0 }
 0x130   :  { %v2707_v60 = vadd.f32 %v2143_v58, %v2564_v25  ;;  %v389_v61 = vpop.f32.mrb[29].mxu0  ;;  %478 = vadd.xlane.f32.xlu0 %v477_v55 }
 0x131   :  { %v2710_v62 = vadd.f32 %v2564_v25, %v389_v61  ;;  %v2144_v63 = vpop.f32.mrb[30].mxu0 }
 0x132   :  { %v2713_v2 = vadd.f32 %v2144_v63, %v2564_v25  ;;  %v392_v3 = vpop.f32.mrb[31].mxu0  ;;  %481 = vadd.xlane.f32.xlu1 %v480_v59  ;;  %v495_v55 = vsel %vm404_vm0, %v2707_v60, 0.0 }
 0x133   :  { %v2716_v6 = vadd.f32 %v2564_v25, %v392_v3  ;;  %v489_v7 = vsel %vm404_vm0, %v2710_v62, 0.0 }
 0x134   :  { %490 = vadd.xlane.f32.xlu0 %v489_v7 }
 0x135   :  { %v492_v8 = vsel %vm404_vm0, %v2716_v6, 0.0 }
 0x136   :  { %493 = vadd.xlane.f32.xlu1 %v492_v8  ;;  %v498_v8 = vsel %vm404_vm0, %v2713_v2, 0.0 }
 0x188   :  { %v413_v9 = vpop.xlane.xlu1 %412 }
 0x189   :  { %v504_v10 = vmul.f32 0.015625, %v413_v9  ;;  %v407_v11 = vpop.xlane.xlu0 %406 }
 0x18a   :  { %v502_v14 = vmul.f32 0.015625, %v407_v11 }
 0x18b   :  { %v2723_v15 = vsub.f32 %v2567_v27, %v504_v10 }
 0x18c   :  { %v2726_v18 = vsub.f32 %v2570_v29, %v502_v14  ;;  %v416_v25 = vpop.xlane.xlu1 %415 }
 0x18d   :  { %v505_v19 = vmul.f32 0.015625, %v416_v25  ;;  %v410_v20 = vpop.xlane.xlu0 %409  ;;  %v568_v21 = vmul.f32 %v2723_v15, %v2723_v15 }
 0x18e   :  { %v503_v22 = vmul.f32 0.015625, %v410_v20  ;;  %v566_v30 = vmul.f32 %v2726_v18, %v2726_v18 }
 0x18f   :  { %v2731_v23 = vsub.f32 %v2573_v31, %v505_v19  ;;  %v604_v28 = vsel %vm404_vm0, %v568_v21, 0.0 }
 0x190   :  { %v2737_v27 = vsub.f32 %v2578_v34, %v503_v22  ;;  %605 = vadd.xlane.f32.xlu0 %v604_v28  ;;  %v598_v31 = vsel %vm404_vm0, %v566_v30, 0.0 }
 0x191   :  { %v419_v29 = vpop.xlane.xlu0 %418  ;;  %v569_v35 = vmul.f32 %v2731_v23, %v2731_v23 }
 0x192   :  { %v506_v36 = vmul.f32 0.015625, %v419_v29  ;;  %v567_v39 = vmul.f32 %v2737_v27, %v2737_v27 }
 0x193   :  { %v422_v37 = vpop.xlane.xlu1 %421  ;;  %v607_v38 = vsel %vm404_vm0, %v569_v35, 0.0 }
 0x194   :  { %v2746_v43 = vsub.f32 %v2590_v41, %v506_v36  ;;  %v507_v47 = vmul.f32 0.015625, %v422_v37  ;;  %608 = vadd.xlane.f32.xlu1 %v607_v38  ;;  %599 = vadd.xlane.f32.xlu0 %v598_v31  ;;  %v601_v58 = vsel %vm404_vm0, %v567_v39, 0.0 }
 0x195   :  { %v425_v34 = vpop.xlane.xlu0 %424 }
 0x196   :  { %v508_v49 = vmul.f32 0.015625, %v425_v34  ;;  %v2749_v50 = vsub.f32 %v2596_v45, %v507_v47  ;;  %v570_v59 = vmul.f32 %v2746_v43, %v2746_v43 }
 0x197   :  { %v428_v54 = vpop.xlane.xlu1 %427 }
 0x198   :  { %v2757_v41 = vsub.f32 %v2587_v40, %v508_v49  ;;  %v509_v61 = vmul.f32 0.015625, %v428_v54  ;;  %496 = vadd.xlane.f32.xlu0 %v495_v55  ;;  %602 = vadd.xlane.f32.xlu1 %v601_v58  ;;  %v610_v9 = vsel %vm404_vm0, %v570_v59, 0.0  ;;  %v571_v10 = vmul.f32 %v2749_v50, %v2749_v50 }
 0x199   :  { %v431_v63 = vpop.xlane.xlu0 %430 }
 0x19a   :  { %v2760_v3 = vsub.f32 %v2593_v44, %v509_v61  ;;  %v510_v45 = vmul.f32 0.015625, %v431_v63  ;;  %v572_v40 = vmul.f32 %v2757_v41, %v2757_v41  ;;  %v613_v22 = vsel %vm404_vm0, %v571_v10, 0.0 }
 0x19b   :  { %v434_v7 = vpop.xlane.xlu1 %433 }
 0x19c   :  { %v2770_v11 = vsub.f32 %v2610_v53, %v510_v45  ;;  %v511_v14 = vmul.f32 0.015625, %v434_v7  ;;  %499 = vadd.xlane.f32.xlu1 %v498_v8  ;;  %611 = vadd.xlane.f32.xlu0 %v610_v9  ;;  %v573_v19 = vmul.f32 %v2760_v3, %v2760_v3  ;;  %v616_v28 = vsel %vm404_vm0, %v572_v40, 0.0 }
 0x19d   :  { %v437_v44 = vpop.xlane.xlu0 %436 }
 0x19e   :  { %v512_v25 = vmul.f32 0.015625, %v437_v44  ;;  %v2775_v20 = vsub.f32 %v2616_v57, %v511_v14  ;;  %v574_v53 = vmul.f32 %v2770_v11, %v2770_v11  ;;  %v619_v37 = vsel %vm404_vm0, %v573_v19, 0.0 }
 0x19f   :  { %v440_v21 = vpop.xlane.xlu1 %439 }
 0x1a0   :  { %v2782_v30 = vsub.f32 %v2607_v52, %v512_v25  ;;  %v513_v29 = vmul.f32 0.015625, %v440_v21  ;;  %614 = vadd.xlane.f32.xlu1 %v613_v22  ;;  %617 = vadd.xlane.f32.xlu0 %v616_v28  ;;  %v622_v31 = vsel %vm404_vm0, %v574_v53, 0.0  ;;  %v575_v39 = vmul.f32 %v2775_v20, %v2775_v20 }
 0x1a1   :  { %v443_v35 = vpop.xlane.xlu0 %442 }
 0x1a2   :  { %v514_v36 = vmul.f32 0.015625, %v443_v35  ;;  %v2786_v57 = vsub.f32 %v2613_v56, %v513_v29  ;;  %v576_v52 = vmul.f32 %v2782_v30, %v2782_v30  ;;  %v625_v58 = vsel %vm404_vm0, %v575_v39, 0.0  ;;  %v2260_v35 = vld [vmem:[%s3609_s5] sm:$0xff]  }
 0x1a3   :  { %v446_v38 = vpop.xlane.xlu1 %445  ;;  %2145 = vmatprep.subr.bf16.mxu1 %v2260_v35 }
 0x1a4   :  { %v2794_v47 = vsub.f32 %v2630_v1, %v514_v36  ;;  %v515_v34 = vmul.f32 0.015625, %v446_v38  ;;  %620 = vadd.xlane.f32.xlu1 %v619_v37  ;;  %623 = vadd.xlane.f32.xlu0 %v622_v31  ;;  %v628_v59 = vsel %vm404_vm0, %v576_v52, 0.0  ;;  %v577_v61 = vmul.f32 %v2786_v57, %v2786_v57 }
 0x1a5   :  { %v449_v49 = vpop.xlane.xlu0 %448  ;;  %2146 = vmatpush3.bf16.msra.mxu1 %v2260_v35 }
 0x1a6   :  { %v2797_v54 = vsub.f32 %v2636_v5, %v515_v34  ;;  %v516_v56 = vmul.f32 0.015625, %v449_v49  ;;  %v578_v1 = vmul.f32 %v2794_v47, %v2794_v47  ;;  %v631_v40 = vsel %vm404_vm0, %v577_v61, 0.0 }
 0x1a7   :  { %v452_v55 = vpop.xlane.xlu1 %451 }
 0x1a8   :  { %v2806_v63 = vsub.f32 %v2627_v0, %v516_v56  ;;  %v517_v45 = vmul.f32 0.015625, %v452_v55  ;;  %626 = vadd.xlane.f32.xlu1 %v625_v58  ;;  %629 = vadd.xlane.f32.xlu0 %v628_v59  ;;  %v579_v8 = vmul.f32 %v2797_v54, %v2797_v54  ;;  %v634_v14 = vsel %vm404_vm0, %v578_v1, 0.0  ;;  %v2261_v56 = vld [vmem:[%s3609_s5 + $0x8] sm:$0xff]  }
 0x1a9   :  { %v455_v5 = vpop.xlane.xlu0 %454  ;;  %2147 = vmatprep.subr.bf16.mxu1 %v2261_v56 }
 0x1aa   :  { %v518_v7 = vmul.f32 0.015625, %v455_v5  ;;  %v2811_v9 = vsub.f32 %v2633_v4, %v517_v45  ;;  %v580_v0 = vmul.f32 %v2806_v63, %v2806_v63  ;;  %v637_v22 = vsel %vm404_vm0, %v579_v8, 0.0  ;;  %2148 = vmatpush3.bf16.msra.mxu1 %v2261_v56  ;;  %v2262_v8 = vld [vmem:[%s3609_s5 + $0x10] sm:$0xff]  }
 0x1ab   :  { %v458_v10 = vpop.xlane.xlu1 %457  ;;  %2149 = vmatprep.subr.bf16.mxu1 %v2262_v8 }
 0x1ac   :  { %v2818_v44 = vsub.f32 %v2650_v13, %v518_v7  ;;  %v519_v25 = vmul.f32 0.015625, %v458_v10  ;;  %632 = vadd.xlane.f32.xlu1 %v631_v40  ;;  %635 = vadd.xlane.f32.xlu0 %v634_v14  ;;  %v640_v53 = vsel %vm404_vm0, %v580_v0, 0.0  ;;  %v581_v29 = vmul.f32 %v2811_v9, %v2811_v9 }
 0x1ad   :  { %v461_v19 = vpop.xlane.xlu0 %460 }
 0x1ae   :  { %v520_v21 = vmul.f32 0.015625, %v461_v19  ;;  %v2822_v4 = vsub.f32 %v2656_v17, %v519_v25  ;;  %v582_v13 = vmul.f32 %v2818_v44, %v2818_v44  ;;  %v643_v52 = vsel %vm404_vm0, %v581_v29, 0.0  ;;  %2150 = vmatpush3.bf16.msra.mxu1 %v2262_v8 }
 0x1af   :  { %v464_v28 = vpop.xlane.xlu1 %463 }
 0x1b0   :  { %v2833_v36 = vsub.f32 %v2647_v12, %v520_v21  ;;  %v521_v37 = vmul.f32 0.015625, %v464_v28  ;;  %638 = vadd.xlane.f32.xlu1 %v637_v22  ;;  %641 = vadd.xlane.f32.xlu0 %v640_v53  ;;  %v646_v34 = vsel %vm404_vm0, %v582_v13, 0.0  ;;  %v583_v49 = vmul.f32 %v2822_v4, %v2822_v4  ;;  %v2263_v28 = vld [vmem:[%s3609_s5 + $0x18] sm:$0xff]  }
 0x1b1   :  { %v467_v17 = vpop.xlane.xlu0 %466  ;;  %2151 = vmatprep.subr.bf16.mxu1 %v2263_v28 }
 0x1b2   :  { %v2836_v38 = vsub.f32 %v2653_v16, %v521_v37  ;;  %v522_v31 = vmul.f32 0.015625, %v467_v17  ;;  %v584_v12 = vmul.f32 %v2833_v36, %v2833_v36  ;;  %v649_v5 = vsel %vm404_vm0, %v583_v49, 0.0  ;;  %2152 = vmatpush3.bf16.msra.mxu1 %v2263_v28 }
 0x1b3   :  { %v470_v39 = vpop.xlane.xlu1 %469 }
 0x1b4   :  { %v2848_v16 = vsub.f32 %v2670_v26, %v522_v31  ;;  %v523_v55 = vmul.f32 0.015625, %v470_v39  ;;  %644 = vadd.xlane.f32.xlu1 %v643_v52  ;;  %647 = vadd.xlane.f32.xlu0 %v646_v34  ;;  %v585_v1 = vmul.f32 %v2836_v38, %v2836_v38  ;;  %v652_v7 = vsel %vm404_vm0, %v584_v12, 0.0 }
 0x1b5   :  { %v473_v58 = vpop.xlane.xlu0 %472 }
 0x1b6   :  { %v2851_v59 = vsub.f32 %v2676_v33, %v523_v55  ;;  %v524_v61 = vmul.f32 0.015625, %v473_v58  ;;  %v586_v26 = vmul.f32 %v2848_v16, %v2848_v16  ;;  %v655_v14 = vsel %vm404_vm0, %v585_v1, 0.0 }
 0x1b7   :  { %v476_v45 = vpop.xlane.xlu1 %475 }
 0x1b8   :  { %v2863_v33 = vsub.f32 %v2667_v24, %v524_v61  ;;  %v525_v10 = vmul.f32 0.015625, %v476_v45  ;;  %650 = vadd.xlane.f32.xlu1 %v649_v5  ;;  %653 = vadd.xlane.f32.xlu0 %v652_v7  ;;  %v587_v0 = vmul.f32 %v2851_v59, %v2851_v59  ;;  %v658_v22 = vsel %vm404_vm0, %v586_v26, 0.0 }
 0x1b9   :  { %v485_v40 = vpop.xlane.xlu0 %484 }
 0x1ba   :  { %v2869_v25 = vsub.f32 %v2673_v32, %v525_v10  ;;  %v528_v19 = vmul.f32 0.015625, %v485_v40  ;;  %v588_v24 = vmul.f32 %v2863_v33, %v2863_v33  ;;  %v661_v13 = vsel %vm404_vm0, %v587_v0, 0.0 }
 0x1bb   :  { %v488_v21 = vpop.xlane.xlu1 %487 }
 0x1bc   :  { %656 = vadd.xlane.f32.xlu1 %v655_v14  ;;  %659 = vadd.xlane.f32.xlu0 %v658_v22  ;;  %v2879_v32 = vsub.f32 %v2687_v42, %v528_v19  ;;  %v529_v35 = vmul.f32 0.015625, %v488_v21  ;;  %v664_v17 = vsel %vm404_vm0, %v588_v24, 0.0  ;;  %v589_v31 = vmul.f32 %v2869_v25, %v2869_v25 }
 0x1bd   :  { %v479_v53 = vpop.xlane.xlu0 %478 }
 0x1be   :  { %v526_v29 = vmul.f32 0.015625, %v479_v53  ;;  %v2893_v56 = vsub.f32 %v2693_v48, %v529_v35  ;;  %v667_v58 = vsel %vm404_vm0, %v589_v31, 0.0 }
 0x1bf   :  { %v482_v37 = vpop.xlane.xlu1 %481 }
 0x1c0   :  { %v2885_v39 = vsub.f32 %v2690_v46, %v526_v29  ;;  %v527_v52 = vmul.f32 0.015625, %v482_v37  ;;  %662 = vadd.xlane.f32.xlu1 %v661_v13  ;;  %665 = vadd.xlane.f32.xlu0 %v664_v17  ;;  %v592_v46 = vmul.f32 %v2879_v32, %v2879_v32  ;;  %v593_v7 = vmul.f32 %v2893_v56, %v2893_v56 }
 0x1c1   :  { %v491_v34 = vpop.xlane.xlu0 %490 }
 0x1c2   :  { %v2888_v49 = vsub.f32 %v2698_v51, %v527_v52  ;;  %v530_v12 = vmul.f32 0.015625, %v491_v34  ;;  %v590_v42 = vmul.f32 %v2885_v39, %v2885_v39  ;;  %v679_v8 = vsel %vm404_vm0, %v593_v7, 0.0 }
 0x1c3   :  { %v494_v55 = vpop.xlane.xlu1 %493 }
 0x1c4   :  { %v2899_v61 = vsub.f32 %v2710_v62, %v530_v12  ;;  %v531_v1 = vmul.f32 0.015625, %v494_v55  ;;  %668 = vadd.xlane.f32.xlu1 %v667_v58  ;;  %v670_v51 = vsel %vm404_vm0, %v590_v42, 0.0  ;;  %v591_v45 = vmul.f32 %v2888_v49, %v2888_v49 }
 0x1c5   :  { %671 = vadd.xlane.f32.xlu0 %v670_v51  ;;  %v676_v62 = vsel %vm404_vm0, %v592_v46, 0.0 }
 0x1c6   :  { %v673_v48 = vsel %vm404_vm0, %v591_v45, 0.0  ;;  %v2906_v5 = vsub.f32 %v2716_v6, %v531_v1  ;;  %v594_v26 = vmul.f32 %v2899_v61, %v2899_v61 }
 0x1c8   :  { %674 = vadd.xlane.f32.xlu1 %v673_v48  ;;  %v595_v10 = vmul.f32 %v2906_v5, %v2906_v5  ;;  %v682_v40 = vsel %vm404_vm0, %v594_v26, 0.0 }
 0x1c9   :  { %677 = vadd.xlane.f32.xlu0 %v676_v62 }
 0x1ca   :  { %v685_v6 = vsel %vm404_vm0, %v595_v10, 0.0  ;;  %v2933_v10 = vld [vmem:[%s3607_s3] ss:$0 sm:$0xff] }
 0x1cc   :  { %680 = vadd.xlane.f32.xlu1 %v679_v8 }
 0x1cd   :  { %683 = vadd.xlane.f32.xlu0 %v682_v40 }
 0x1d0   :  { %686 = vadd.xlane.f32.xlu1 %v685_v6 }
 0x21d   :  { %v606_v14 = vpop.xlane.xlu0 %605 }
 0x21e   :  { %v696_v0 = vmul.f32 0.015625, %v606_v14 }
 0x220   :  { %v728_v19 = vadd.f32 1e-05, %v696_v0 }
 0x221   :  { %v609_v21 = vpop.xlane.xlu1 %608  ;;  %v600_v22 = vpop.xlane.xlu0 %599 }
 0x222   :  { %2264 = vrsqrt.f32 %v728_v19  ;;  %v697_v24 = vmul.f32 0.015625, %v609_v21  ;;  %v694_v28 = vmul.f32 0.015625, %v600_v22 }
 0x224   :  { %v729_v53 = vadd.f32 1e-05, %v697_v24  ;;  %v726_v29 = vadd.f32 1e-05, %v694_v28 }
 0x225   :  { %v603_v13 = vpop.xlane.xlu1 %602  ;;  %v497_v35 = vpop.xlane.xlu0 %496 }
 0x226   :  { %2266 = vrsqrt.f32 %v729_v53  ;;  %v695_v37 = vmul.f32 0.015625, %v603_v13  ;;  %v532_v17 = vmul.f32 0.015625, %v497_v35 }
 0x227   :  { %2268 = vrsqrt.f32 %v726_v29  ;;  %v2942_v29 = vld [vmem:[%s3608_s4] ss:$0 sm:$0xff] }
 0x228   :  { %v727_v31 = vadd.f32 1e-05, %v695_v37  ;;  %v2919_v52 = vsub.f32 %v2707_v60, %v532_v17 }
 0x229   :  { %v500_v34 = vpop.xlane.xlu1 %499  ;;  %v612_v12 = vpop.xlane.xlu0 %611 }
 0x22a   :  { %2270 = vrsqrt.f32 %v727_v31  ;;  %v533_v42 = vmul.f32 0.015625, %v500_v34  ;;  %v698_v55 = vmul.f32 0.015625, %v612_v12  ;;  %v596_v58 = vmul.f32 %v2919_v52, %v2919_v52 }
 0x22c   :  { %v2265_v46 = vpop.eup %2264  ;;  %v2924_v1 = vsub.f32 %v2713_v2, %v533_v42  ;;  %v730_v51 = vadd.f32 1e-05, %v698_v55  ;;  %v688_v45 = vsel %vm404_vm0, %v596_v58, 0.0 }
 0x22d   :  { %v792_v48 = vmul.f32 %v2265_v46, %v2723_v15  ;;  %v615_v7 = vpop.xlane.xlu1 %614  ;;  %689 = vadd.xlane.f32.xlu0 %v688_v45  ;;  %v618_v60 = vpop.xlane.xlu0 %617 }
 0x22e   :  { %2272 = vrsqrt.f32 %v730_v51  ;;  %v699_v62 = vmul.f32 0.015625, %v615_v7  ;;  %v700_v26 = vmul.f32 0.015625, %v618_v60  ;;  %v597_v8 = vmul.f32 %v2924_v1, %v2924_v1 }
 0x22f   :  { %v830_v22 = vmul.f32 %v2933_v10, %v792_v48 }
 0x230   :  { %v2267_v2 = vpop.eup %2266  ;;  %v731_v40 = vadd.f32 1e-05, %v699_v62  ;;  %v732_v6 = vadd.f32 1e-05, %v700_v26  ;;  %v691_v14 = vsel %vm404_vm0, %v597_v8, 0.0 }
 0x231   :  { %v2269_v15 = vpop.eup %2268  ;;  %v793_v0 = vmul.f32 %v2267_v2, %v2731_v23  ;;  %692 = vadd.xlane.f32.xlu1 %v691_v14  ;;  %v621_v19 = vpop.xlane.xlu1 %620  ;;  %v868_v58 = vadd.f32 %v2942_v29, %v830_v22 }
 0x232   :  { %v624_v21 = vpop.xlane.xlu0 %623  ;;  %2274 = vrsqrt.f32 %v731_v40  ;;  %v701_v24 = vmul.f32 0.015625, %v621_v19  ;;  %v790_v53 = vmul.f32 %v2269_v15, %v2726_v18 }
 0x233   :  { %v702_v28 = vmul.f32 0.015625, %v624_v21  ;;  %2276 = vrsqrt.f32 %v732_v6  ;;  %v831_v13 = vmul.f32 %v2933_v10, %v793_v0  ;;  %v900_v6 = vmax.f32 %v868_v58, 0.0 }
 0x234   :  { %v2271_v35 = vpop.eup %2270  ;;  %v733_v23 = vadd.f32 1e-05, %v701_v24  ;;  %v828_v17 = vmul.f32 %v2933_v10, %v790_v53 }
 0x235   :  { %v734_v37 = vadd.f32 1e-05, %v702_v28  ;;  %v627_v31 = vpop.xlane.xlu1 %626  ;;  %v791_v12 = vmul.f32 %v2271_v35, %v2737_v27  ;;  %v869_v42 = vadd.f32 %v2942_v29, %v831_v13 }
 0x236   :  { %v630_v34 = vpop.xlane.xlu0 %629  ;;  %2278 = vrsqrt.f32 %v733_v23  ;;  %v703_v18 = vmul.f32 0.015625, %v627_v31  ;;  %v866_v51 = vadd.f32 %v2942_v29, %v828_v17 }
 0x237   :  { %v704_v55 = vmul.f32 0.015625, %v630_v34  ;;  %2280 = vrsqrt.f32 %v734_v37  ;;  %v829_v46 = vmul.f32 %v2933_v10, %v791_v12  ;;  %v901_v8 = vmax.f32 %v869_v42, 0.0 }
 0x238   :  { %v2273_v45 = vpop.eup %2272  ;;  %v735_v48 = vadd.f32 1e-05, %v703_v18  ;;  %v898_v14 = vmax.f32 %v866_v51, 0.0 }
 0x239   :  { %v736_v7 = vadd.f32 1e-05, %v704_v55  ;;  %v794_v60 = vmul.f32 %v2273_v45, %v2746_v43  ;;  %v633_v62 = vpop.xlane.xlu1 %632  ;;  %v867_v27 = vadd.f32 %v2942_v29, %v829_v46  ;;  %v931_v35 = vpack.c.bf16 %v901_v8, %v900_v6 }
 0x23a   :  { %v636_v26 = vpop.xlane.xlu0 %635  ;;  %2282 = vrsqrt.f32 %v735_v48  ;;  %v705_v2 = vmul.f32 0.015625, %v633_v62 }
 0x23b   :  { %v706_v40 = vmul.f32 0.015625, %v636_v26  ;;  %2284 = vrsqrt.f32 %v736_v7  ;;  %v899_v15 = vmax.f32 %v867_v27, 0.0  ;;  %v832_v0 = vmul.f32 %v2933_v10, %v794_v60 }
 0x23c   :  { %v2275_v19 = vpop.eup %2274  ;;  %v737_v21 = vadd.f32 1e-05, %v705_v2 }
 0x23d   :  { %v738_v22 = vadd.f32 1e-05, %v706_v40  ;;  %v2277_v24 = vpop.eup %2276  ;;  %v795_v43 = vmul.f32 %v2275_v19, %v2749_v50  ;;  %v639_v28 = vpop.xlane.xlu1 %638  ;;  %v930_v13 = vpack.c.bf16 %v899_v15, %v898_v14  ;;  %v870_v23 = vadd.f32 %v2942_v29, %v832_v0 }
 0x23e   :  { %v642_v53 = vpop.xlane.xlu0 %641  ;;  %v796_v37 = vmul.f32 %v2277_v24, %v2757_v41  ;;  %2286 = vrsqrt.f32 %v737_v21  ;;  %v707_v17 = vmul.f32 0.015625, %v639_v28 }
 0x23f   :  { %v708_v31 = vmul.f32 0.015625, %v642_v53  ;;  %2288 = vrsqrt.f32 %v738_v22  ;;  %2153 = vmatprep.mubr.msk.bf16.mxu1 %vm404_vm0, %v930_v13  ;;  %v833_v34 = vmul.f32 %v2933_v10, %v795_v43  ;;  %v902_v45 = vmax.f32 %v870_v23, 0.0 }
 0x240   :  { %v2279_v12 = vpop.eup %2278  ;;  %v739_v42 = vadd.f32 1e-05, %v707_v17  ;;  %2154 = vmatmul.mubr.msk.bf16.vlgmr.msra.gmra.mrb[0].mxu1 %vm404_vm0, %v931_v35  ;;  %v834_v50 = vmul.f32 %v2933_v10, %v796_v37 }
 0x241   :  { %v740_v18 = vadd.f32 1e-05, %v708_v31  ;;  %v2281_v55 = vpop.eup %2280  ;;  %v797_v58 = vmul.f32 %v2279_v12, %v2760_v3  ;;  %v645_v46 = vpop.xlane.xlu1 %644  ;;  %v871_v51 = vadd.f32 %v2942_v29, %v833_v34 }
 0x242   :  { %v648_v41 = vpop.xlane.xlu0 %647  ;;  %v798_v48 = vmul.f32 %v2281_v55, %v2770_v11  ;;  %2290 = vrsqrt.f32 %v739_v42  ;;  %v709_v7 = vmul.f32 0.015625, %v645_v46  ;;  %v872_v27 = vadd.f32 %v2942_v29, %v834_v50 }
 0x243   :  { %v710_v60 = vmul.f32 0.015625, %v648_v41  ;;  %2292 = vrsqrt.f32 %v740_v18  ;;  %v903_v62 = vmax.f32 %v871_v51, 0.0  ;;  %v835_v26 = vmul.f32 %v2933_v10, %v797_v58 }
 0x244   :  { %v2283_v8 = vpop.eup %2282  ;;  %v741_v2 = vadd.f32 1e-05, %v709_v7  ;;  %v836_v3 = vmul.f32 %v2933_v10, %v798_v48  ;;  %v904_v21 = vmax.f32 %v872_v27, 0.0 }
 0x245   :  { %v742_v40 = vadd.f32 1e-05, %v710_v60  ;;  %v2285_v6 = vpop.eup %2284  ;;  %v799_v14 = vmul.f32 %v2283_v8, %v2775_v20  ;;  %v651_v15 = vpop.xlane.xlu1 %650  ;;  %v932_v11 = vpack.c.bf16 %v903_v62, %v902_v45  ;;  %v873_v19 = vadd.f32 %v2942_v29, %v835_v26 }
 0x246   :  { %v654_v0 = vpop.xlane.xlu0 %653  ;;  %v800_v22 = vmul.f32 %v2285_v6, %v2782_v30  ;;  %2294 = vrsqrt.f32 %v741_v2  ;;  %v711_v24 = vmul.f32 0.015625, %v651_v15  ;;  %v874_v13 = vadd.f32 %v2942_v29, %v836_v3 }
 0x247   :  { %v712_v43 = vmul.f32 0.015625, %v654_v0  ;;  %2296 = vrsqrt.f32 %v742_v40  ;;  %2157 = vmatprep.mubr.msk.bf16.mxu1 %vm404_vm0, %v932_v11  ;;  %v905_v28 = vmax.f32 %v873_v19, 0.0  ;;  %v837_v53 = vmul.f32 %v2933_v10, %v799_v14 }
 0x248   :  { %v2287_v20 = vpop.eup %2286  ;;  %v743_v35 = vadd.f32 1e-05, %v711_v24  ;;  %v838_v37 = vmul.f32 %v2933_v10, %v800_v22  ;;  %v906_v18 = vmax.f32 %v874_v13, 0.0 }
 0x249   :  { %v744_v23 = vadd.f32 1e-05, %v712_v43  ;;  %v2289_v17 = vpop.eup %2288  ;;  %v801_v31 = vmul.f32 %v2287_v20, %v2786_v57  ;;  %v657_v30 = vpop.xlane.xlu1 %656  ;;  %v933_v12 = vpack.c.bf16 %v905_v28, %v904_v21  ;;  %v875_v42 = vadd.f32 %v2942_v29, %v837_v53 }
 0x24a   :  { %v660_v34 = vpop.xlane.xlu0 %659  ;;  %v802_v50 = vmul.f32 %v2289_v17, %v2794_v47  ;;  %2298 = vrsqrt.f32 %v743_v35  ;;  %v713_v55 = vmul.f32 0.015625, %v657_v30  ;;  %v876_v51 = vadd.f32 %v2942_v29, %v838_v37 }
 0x24b   :  { %v714_v58 = vmul.f32 0.015625, %v660_v34  ;;  %2300 = vrsqrt.f32 %v744_v23  ;;  %2158 = vmatmul.mubr.msk.bf16.gmra.mrb[4].mxu1 %vm404_vm0, %v933_v12  ;;  %v907_v46 = vmax.f32 %v875_v42, 0.0  ;;  %v839_v41 = vmul.f32 %v2933_v10, %v801_v31 }
 0x24c   :  { %v2291_v57 = vpop.eup %2290  ;;  %v745_v45 = vadd.f32 1e-05, %v713_v55  ;;  %v840_v7 = vmul.f32 %v2933_v10, %v802_v50  ;;  %v908_v2 = vmax.f32 %v876_v51, 0.0 }
 0x24d   :  { %v746_v48 = vadd.f32 1e-05, %v714_v58  ;;  %v2293_v60 = vpop.eup %2292  ;;  %v803_v62 = vmul.f32 %v2291_v57, %v2797_v54  ;;  %v663_v47 = vpop.xlane.xlu1 %662  ;;  %v934_v27 = vpack.c.bf16 %v907_v46, %v906_v18  ;;  %v877_v8 = vadd.f32 %v2942_v29, %v839_v41 }
 0x24e   :  { %v666_v26 = vpop.xlane.xlu0 %665  ;;  %v804_v40 = vmul.f32 %v2293_v60, %v2806_v63  ;;  %2302 = vrsqrt.f32 %v745_v45  ;;  %v715_v3 = vmul.f32 0.015625, %v663_v47  ;;  %v878_v0 = vadd.f32 %v2942_v29, %v840_v7 }
 0x24f   :  { %v716_v6 = vmul.f32 0.015625, %v666_v26  ;;  %2304 = vrsqrt.f32 %v746_v48  ;;  %2161 = vmatprep.mubr.msk.bf16.mxu1 %vm404_vm0, %v934_v27  ;;  %v909_v14 = vmax.f32 %v877_v8, 0.0  ;;  %v841_v15 = vmul.f32 %v2933_v10, %v803_v62 }
 0x250   :  { %v2295_v54 = vpop.eup %2294  ;;  %v747_v11 = vadd.f32 1e-05, %v715_v3  ;;  %v842_v21 = vmul.f32 %v2933_v10, %v804_v40  ;;  %v910_v53 = vmax.f32 %v878_v0, 0.0 }
 0x251   :  { %v748_v19 = vadd.f32 1e-05, %v716_v6  ;;  %v2297_v22 = vpop.eup %2296  ;;  %v805_v24 = vmul.f32 %v2295_v54, %v2811_v9  ;;  %v669_v63 = vpop.xlane.xlu1 %668  ;;  %v935_v43 = vpack.c.bf16 %v909_v14, %v908_v2  ;;  %v879_v28 = vadd.f32 %v2942_v29, %v841_v15 }
 0x252   :  { %v806_v13 = vmul.f32 %v2297_v22, %v2818_v44  ;;  %2306 = vrsqrt.f32 %v747_v11  ;;  %v717_v20 = vmul.f32 0.015625, %v669_v63  ;;  %v672_v35 = vpop.xlane.xlu0 %671  ;;  %v880_v23 = vadd.f32 %v2942_v29, %v842_v21 }
 0x253   :  { %2308 = vrsqrt.f32 %v748_v19  ;;  %v718_v37 = vmul.f32 0.015625, %v672_v35  ;;  %2162 = vmatmul.mubr.msk.bf16.gmra.mrb[8].mxu1 %vm404_vm0, %v935_v43  ;;  %v911_v17 = vmax.f32 %v879_v28, 0.0  ;;  %v843_v31 = vmul.f32 %v2933_v10, %v805_v24 }
 0x254   :  { %v2299_v9 = vpop.eup %2298  ;;  %v749_v30 = vadd.f32 1e-05, %v717_v20  ;;  %v912_v34 = vmax.f32 %v880_v23, 0.0  ;;  %v844_v12 = vmul.f32 %v2933_v10, %v806_v13 }
 0x255   :  { %v2301_v42 = vpop.eup %2300  ;;  %v807_v44 = vmul.f32 %v2299_v9, %v2822_v4  ;;  %v750_v18 = vadd.f32 1e-05, %v718_v37  ;;  %v675_v50 = vpop.xlane.xlu1 %674  ;;  %v936_v55 = vpack.c.bf16 %v911_v17, %v910_v53  ;;  %v881_v58 = vadd.f32 %v2942_v29, %v843_v31 }
 0x256   :  { %v808_v46 = vmul.f32 %v2301_v42, %v2833_v36  ;;  %2310 = vrsqrt.f32 %v749_v30  ;;  %v719_v41 = vmul.f32 0.015625, %v675_v50  ;;  %v678_v51 = vpop.xlane.xlu0 %677  ;;  %v882_v57 = vadd.f32 %v2942_v29, %v844_v12 }
 0x257   :  { %2312 = vrsqrt.f32 %v750_v18  ;;  %v720_v45 = vmul.f32 0.015625, %v678_v51  ;;  %2165 = vmatprep.mubr.msk.bf16.mxu1 %vm404_vm0, %v936_v55  ;;  %v913_v48 = vmax.f32 %v881_v58, 0.0  ;;  %v845_v7 = vmul.f32 %v2933_v10, %v807_v44 }
 0x258   :  { %v2303_v4 = vpop.eup %2302  ;;  %v751_v60 = vadd.f32 1e-05, %v719_v41  ;;  %v914_v62 = vmax.f32 %v882_v57, 0.0  ;;  %v846_v47 = vmul.f32 %v2933_v10, %v808_v46 }
 0x259   :  { %v2305_v26 = vpop.eup %2304  ;;  %v809_v36 = vmul.f32 %v2303_v4, %v2836_v38  ;;  %v752_v27 = vadd.f32 1e-05, %v720_v45  ;;  %v681_v8 = vpop.xlane.xlu1 %680  ;;  %v937_v2 = vpack.c.bf16 %v913_v48, %v912_v34  ;;  %v883_v40 = vadd.f32 %v2942_v29, %v845_v7 }
 0x25a   :  { %v810_v3 = vmul.f32 %v2305_v26, %v2848_v16  ;;  %2314 = vrsqrt.f32 %v751_v60  ;;  %v721_v6 = vmul.f32 0.015625, %v681_v8  ;;  %v684_v14 = vpop.xlane.xlu0 %683  ;;  %v884_v15 = vadd.f32 %v2942_v29, %v846_v47 }
 0x25b   :  { %2316 = vrsqrt.f32 %v752_v27  ;;  %v722_v0 = vmul.f32 0.015625, %v684_v14  ;;  %2166 = vmatmul.mubr.msk.bf16.gmra.mrb[12].mxu1 %vm404_vm0, %v937_v2  ;;  %v915_v54 = vmax.f32 %v883_v40, 0.0  ;;  %v847_v11 = vmul.f32 %v2933_v10, %v809_v36 }
 0x25c   :  { %v2307_v38 = vpop.eup %2306  ;;  %v753_v19 = vadd.f32 1e-05, %v721_v6  ;;  %v848_v21 = vmul.f32 %v2933_v10, %v810_v3  ;;  %v916_v20 = vmax.f32 %v884_v15, 0.0 }
 0x25d   :  { %v2309_v22 = vpop.eup %2308  ;;  %v811_v24 = vmul.f32 %v2307_v38, %v2851_v59  ;;  %v754_v16 = vadd.f32 1e-05, %v722_v0  ;;  %v687_v63 = vpop.xlane.xlu1 %686  ;;  %v938_v43 = vpack.c.bf16 %v915_v54, %v914_v62  ;;  %v885_v28 = vadd.f32 %v2942_v29, %v847_v11 }
 0x25e   :  { %v812_v53 = vmul.f32 %v2309_v22, %v2863_v33  ;;  %2318 = vrsqrt.f32 %v753_v19  ;;  %v723_v13 = vmul.f32 0.015625, %v687_v63  ;;  %v886_v37 = vadd.f32 %v2942_v29, %v848_v21 }
 0x25f   :  { %2320 = vrsqrt.f32 %v754_v16  ;;  %2169 = vmatprep.mubr.msk.bf16.mxu1 %vm404_vm0, %v938_v43  ;;  %v917_v35 = vmax.f32 %v885_v28, 0.0  ;;  %v849_v23 = vmul.f32 %v2933_v10, %v811_v24 }
 0x260   :  { %v2311_v17 = vpop.eup %2310  ;;  %v755_v59 = vadd.f32 1e-05, %v723_v13  ;;  %v850_v31 = vmul.f32 %v2933_v10, %v812_v53  ;;  %v918_v42 = vmax.f32 %v886_v37, 0.0 }
 0x261   :  { %v2313_v9 = vpop.eup %2312  ;;  %v813_v30 = vmul.f32 %v2311_v17, %v2869_v25  ;;  %v939_v34 = vpack.c.bf16 %v917_v35, %v916_v20  ;;  %v887_v33 = vadd.f32 %v2942_v29, %v849_v23 }
 0x262   :  { %v814_v12 = vmul.f32 %v2313_v9, %v2885_v39  ;;  %2322 = vrsqrt.f32 %v755_v59  ;;  %v888_v50 = vadd.f32 %v2942_v29, %v850_v31 }
 0x263   :  { %2170 = vmatmul.mubr.msk.bf16.gmra.mrb[16].mxu1 %vm404_vm0, %v939_v34  ;;  %v919_v44 = vmax.f32 %v887_v33, 0.0  ;;  %v851_v18 = vmul.f32 %v2933_v10, %v813_v30 }
 0x264   :  { %v2315_v55 = vpop.eup %2314  ;;  %v852_v58 = vmul.f32 %v2933_v10, %v814_v12  ;;  %v920_v57 = vmax.f32 %v888_v50, 0.0 }
 0x265   :  { %v2317_v46 = vpop.eup %2316  ;;  %v815_v25 = vmul.f32 %v2315_v55, %v2888_v49  ;;  %v940_v41 = vpack.c.bf16 %v919_v44, %v918_v42  ;;  %v889_v51 = vadd.f32 %v2942_v29, %v851_v18 }
 0x266   :  { %v816_v39 = vmul.f32 %v2317_v46, %v2879_v32  ;;  %v890_v7 = vadd.f32 %v2942_v29, %v852_v58 }
 0x267   :  { %2173 = vmatprep.mubr.msk.bf16.mxu1 %vm404_vm0, %v940_v41  ;;  %v921_v45 = vmax.f32 %v889_v51, 0.0  ;;  %v853_v48 = vmul.f32 %v2933_v10, %v815_v25 }
 0x268   :  { %v2319_v4 = vpop.eup %2318  ;;  %v854_v60 = vmul.f32 %v2933_v10, %v816_v39  ;;  %v922_v32 = vmax.f32 %v890_v7, 0.0  ;;  %v3075_v39 = vld [vmem:[%s3610_s6] ss:$0 sm:$0xff] }
 0x269   :  { %v2321_v62 = vpop.eup %2320  ;;  %v817_v47 = vmul.f32 %v2319_v4, %v2893_v56  ;;  %v941_v49 = vpack.c.bf16 %v921_v45, %v920_v57  ;;  %v891_v26 = vadd.f32 %v2942_v29, %v853_v48 }
 0x26a   :  { %v818_v36 = vmul.f32 %v2321_v62, %v2899_v61  ;;  %v892_v2 = vadd.f32 %v2942_v29, %v854_v60 }
 0x26b   :  { %2174 = vmatmul.mubr.msk.bf16.gmra.mrb[20].mxu1 %vm404_vm0, %v941_v49  ;;  %v923_v27 = vmax.f32 %v891_v26, 0.0  ;;  %v855_v8 = vmul.f32 %v2933_v10, %v817_v47 }
 0x26c   :  { %v2323_v40 = vpop.eup %2322  ;;  %v856_v3 = vmul.f32 %v2933_v10, %v818_v36  ;;  %v924_v15 = vmax.f32 %v892_v2, 0.0 }
 0x26d   :  { %v819_v6 = vmul.f32 %v2323_v40, %v2906_v5  ;;  %v942_v14 = vpack.c.bf16 %v923_v27, %v922_v32  ;;  %v893_v56 = vadd.f32 %v2942_v29, %v855_v8 }
 0x26e   :  { %v894_v54 = vadd.f32 %v2942_v29, %v856_v3 }
 0x26f   :  { %2177 = vmatprep.mubr.msk.bf16.mxu1 %vm404_vm0, %v942_v14  ;;  %v925_v61 = vmax.f32 %v893_v56, 0.0  ;;  %v857_v0 = vmul.f32 %v2933_v10, %v819_v6 }
 0x270   :  { %v926_v19 = vmax.f32 %v894_v54, 0.0 }
 0x271   :  { %v943_v11 = vpack.c.bf16 %v925_v61, %v924_v15  ;;  %v895_v38 = vadd.f32 %v2942_v29, %v857_v0 }
 0x273   :  { %2178 = vmatmul.mubr.msk.bf16.gmra.mrb[24].mxu1 %vm404_vm0, %v943_v11  ;;  %v927_v21 = vmax.f32 %v895_v38, 0.0 }
 0x275   :  { %v944_v22 = vpack.c.bf16 %v927_v21, %v926_v19 }
 0x277   :  { %2181 = vmatprep.mubr.msk.bf16.mxu1 %vm404_vm0, %v944_v22 }
 0x2ba   :  { %v690_v5 = vpop.xlane.xlu0 %689 }
 0x2bb   :  { %v724_v24 = vmul.f32 0.015625, %v690_v5 }
 0x2bd   :  { %v756_v16 = vadd.f32 1e-05, %v724_v24 }
 0x2be   :  { %v693_v63 = vpop.xlane.xlu1 %692 }
 0x2bf   :  { %2324 = vrsqrt.f32 %v756_v16  ;;  %v725_v43 = vmul.f32 0.015625, %v693_v63 }
 0x2c1   :  { %v757_v28 = vadd.f32 1e-05, %v725_v43 }
 0x2c3   :  { %2326 = vrsqrt.f32 %v757_v28 }
 0x2c9   :  { %v2325_v53 = vpop.eup %2324 }
 0x2ca   :  { %v820_v13 = vmul.f32 %v2325_v53, %v2919_v52 }
 0x2cc   :  { %v858_v20 = vmul.f32 %v2933_v10, %v820_v13 }
 0x2cd   :  { %v2327_v35 = vpop.eup %2326 }
 0x2ce   :  { %v821_v23 = vmul.f32 %v2327_v35, %v2924_v1  ;;  %v896_v17 = vadd.f32 %v2942_v29, %v858_v20 }
 0x2d0   :  { %v859_v37 = vmul.f32 %v2933_v10, %v821_v23  ;;  %v928_v31 = vmax.f32 %v896_v17, 0.0 }
 0x2d2   :  { %v897_v59 = vadd.f32 %v2942_v29, %v859_v37 }
 0x2d4   :  { %v929_v9 = vmax.f32 %v897_v59, 0.0 }
 0x2d6   :  { %v945_v30 = vpack.c.bf16 %v929_v9, %v928_v31 }
 0x2d8   :  { %2182 = vmatmul.mubr.msk.bf16.gmra.mrb[28].mxu1 %vm404_vm0, %v945_v30 }
 0x313   :  { %v2155_v34 = vpop.f32.mrb[0].mxu1 }
 0x314   :  { %v1069_v33 = vpop.f32.mrb[1].mxu1  ;;  %v3104_v6 = vadd.f32 %v2155_v34, %v3075_v39 }
 0x315   :  { %v2156_v12 = vpop.f32.mrb[2].mxu1  ;;  %v3081_v4 = vadd.f32 %v3075_v39, %v1069_v33 }
 0x316   :  { %v1072_v52 = vpop.f32.mrb[3].mxu1  ;;  %v3109_v56 = vadd.f32 %v2156_v12, %v3075_v39  ;;  %v1203_v54 = vsel %vm1196_vm1, %v3104_v6, 0.0 }
 0x317   :  { %v3089_v47 = vadd.f32 %v3075_v39, %v1072_v52  ;;  %v1197_v32 = vsel %vm1196_vm1, %v3081_v4, 0.0 }
 0x318   :  { %v1206_v21 = vsel %vm1196_vm1, %v3109_v56, 0.0 }
 0x319   :  { %v1200_v40 = vsel %vm1196_vm1, %v3089_v47, 0.0 }
 0x31e   :  { %v3052_v42 = vpop.f32.mrb[4].mxu1 }
 0x31f   :  { %v1085_v44 = vpop.f32.mrb[5].mxu1  ;;  %v3145_v20 = vadd.f32 %v3052_v42, %v3075_v39 }
 0x320   :  { %v3054_v18 = vpop.f32.mrb[6].mxu1  ;;  %v3124_v5 = vadd.f32 %v3075_v39, %v1085_v44 }
 0x321   :  { %v1088_v1 = vpop.f32.mrb[7].mxu1  ;;  %v3151_v23 = vadd.f32 %v3054_v18, %v3075_v39  ;;  %v1215_v59 = vsel %vm1196_vm1, %v3145_v20, 0.0 }
 0x322   :  { %v3129_v16 = vadd.f32 %v3075_v39, %v1088_v1  ;;  %v1209_v28 = vsel %vm1196_vm1, %v3124_v5, 0.0 }
 0x323   :  { %v1218_v9 = vsel %vm1196_vm1, %v3151_v23, 0.0 }
 0x324   :  { %v1212_v13 = vsel %vm1196_vm1, %v3129_v16, 0.0 }
 0x326   :  { %v3056_v10 = vpop.f32.mrb[8].mxu1 }
 0x327   :  { %v3058_v50 = vpop.f32.mrb[9].mxu1  ;;  %v3189_v1 = vadd.f32 %v3056_v10, %v3075_v39 }
 0x328   :  { %v3060_v29 = vpop.f32.mrb[10].mxu1  ;;  %v3167_v30 = vadd.f32 %v3075_v39, %v3058_v50 }
 0x329   :  { %v3062_v55 = vpop.f32.mrb[11].mxu1 }
 0x32a   :  { %v3173_v33 = vadd.f32 %v3075_v39, %v3062_v55  ;;  %v1221_v42 = vsel %vm1196_vm1, %v3167_v30, 0.0  ;;  %v3195_v55 = vadd.f32 %v3060_v29, %v3075_v39 }
 0x32c   :  { %v1224_v18 = vsel %vm1196_vm1, %v3173_v33, 0.0  ;;  %v1230_v10 = vsel %vm1196_vm1, %v3195_v55, 0.0 }
 0x32e   :  { %v3064_v58 = vpop.f32.mrb[12].mxu1 }
 0x32f   :  { %v3066_v46 = vpop.f32.mrb[13].mxu1 }
 0x330   :  { %v3068_v25 = vpop.f32.mrb[14].mxu1 }
 0x331   :  { %v3070_v41 = vpop.f32.mrb[15].mxu1 }
 0x336   :  { %v2171_v51 = vpop.f32.mrb[16].mxu1 }
 0x337   :  { %v1133_v57 = vpop.f32.mrb[17].mxu1  ;;  %v3094_v26 = vadd.f32 %v2171_v51, %v3075_v39 }
 0x338   :  { %v3078_v45 = vadd.f32 %v3075_v39, %v1133_v57  ;;  %v2172_v48 = vpop.f32.mrb[18].mxu1  ;;  %v1227_v57 = vsel %vm1196_vm1, %v3189_v1, 0.0 }
 0x339   :  { %v1136_v7 = vpop.f32.mrb[19].mxu1  ;;  %v3099_v8 = vadd.f32 %v2172_v48, %v3075_v39  ;;  %v1251_v14 = vsel %vm1196_vm1, %v3094_v26, 0.0 }
 0x33a   :  { %v3084_v60 = vadd.f32 %v3075_v39, %v1136_v7  ;;  %v1245_v62 = vsel %vm1196_vm1, %v3078_v45, 0.0 }
 0x33b   :  { %1246 = vadd.xlane.f32.xlu0 %v1245_v62  ;;  %v1254_v15 = vsel %vm1196_vm1, %v3099_v8, 0.0 }
 0x33c   :  { %v1248_v49 = vsel %vm1196_vm1, %v3084_v60, 0.0 }
 0x33d   :  { %1249 = vadd.xlane.f32.xlu1 %v1248_v49 }
 0x33e   :  { %v2175_v36 = vpop.f32.mrb[20].mxu1 }
 0x33f   :  { %1198 = vadd.xlane.f32.xlu0 %v1197_v32  ;;  %v1149_v27 = vpop.f32.mrb[21].mxu1  ;;  %v3134_v43 = vadd.f32 %v2175_v36, %v3075_v39  ;;  %v3208_v36 = vadd.f32 %v3075_v39, %v3066_v46 }
 0x340   :  { %v2176_v2 = vpop.f32.mrb[22].mxu1  ;;  %v3114_v61 = vadd.f32 %v3075_v39, %v1149_v27 }
 0x341   :  { %1201 = vadd.xlane.f32.xlu1 %v1200_v40  ;;  %v1152_v3 = vpop.f32.mrb[23].mxu1  ;;  %v3139_v53 = vadd.f32 %v2176_v2, %v3075_v39  ;;  %v1263_v35 = vsel %vm1196_vm1, %v3134_v43, 0.0  ;;  %v3217_v2 = vadd.f32 %v3075_v39, %v3070_v41  ;;  %v1233_v46 = vsel %vm1196_vm1, %v3208_v36, 0.0 }
 0x342   :  { %v3119_v38 = vadd.f32 %v3075_v39, %v1152_v3  ;;  %v1257_v24 = vsel %vm1196_vm1, %v3114_v61, 0.0  ;;  %v3233_v41 = vadd.f32 %v3064_v58, %v3075_v39 }
 0x343   :  { %1252 = vadd.xlane.f32.xlu0 %v1251_v14  ;;  %v1266_v37 = vsel %vm1196_vm1, %v3139_v53, 0.0 }
 0x344   :  { %v1260_v63 = vsel %vm1196_vm1, %v3119_v38, 0.0 }
 0x345   :  { %1255 = vadd.xlane.f32.xlu1 %v1254_v15  ;;  %v1236_v15 = vsel %vm1196_vm1, %v3217_v2, 0.0 }
 0x346   :  { %v2179_v0 = vpop.f32.mrb[24].mxu1 }
 0x347   :  { %1204 = vadd.xlane.f32.xlu0 %v1203_v54  ;;  %v1165_v11 = vpop.f32.mrb[25].mxu1  ;;  %v3178_v52 = vadd.f32 %v2179_v0, %v3075_v39  ;;  %v3239_v54 = vadd.f32 %v3068_v25, %v3075_v39 }
 0x348   :  { %v2180_v19 = vpop.f32.mrb[26].mxu1  ;;  %v3156_v17 = vadd.f32 %v3075_v39, %v1165_v11 }
 0x349   :  { %1207 = vadd.xlane.f32.xlu1 %v1206_v21  ;;  %v1168_v22 = vpop.f32.mrb[27].mxu1  ;;  %v3183_v44 = vadd.f32 %v2180_v19, %v3075_v39  ;;  %v1275_v50 = vsel %vm1196_vm1, %v3178_v52, 0.0  ;;  %v1239_v19 = vsel %vm1196_vm1, %v3233_v41, 0.0  ;;  %v1242_v58 = vsel %vm1196_vm1, %v3239_v54, 0.0 }
 0x34a   :  { %v3161_v31 = vadd.f32 %v3075_v39, %v1168_v22  ;;  %v1269_v34 = vsel %vm1196_vm1, %v3156_v17, 0.0 }
 0x34b   :  { %1258 = vadd.xlane.f32.xlu0 %v1257_v24  ;;  %v1278_v51 = vsel %vm1196_vm1, %v3183_v44, 0.0 }
 0x34c   :  { %v1272_v12 = vsel %vm1196_vm1, %v3161_v31, 0.0 }
 0x34d   :  { %1261 = vadd.xlane.f32.xlu1 %v1260_v63 }
 0x34f   :  { %1210 = vadd.xlane.f32.xlu0 %v1209_v28 }
 0x351   :  { %1213 = vadd.xlane.f32.xlu1 %v1212_v13 }
 0x353   :  { %1264 = vadd.xlane.f32.xlu0 %v1263_v35 }
 0x355   :  { %1267 = vadd.xlane.f32.xlu1 %v1266_v37 }
 0x357   :  { %1216 = vadd.xlane.f32.xlu0 %v1215_v59 }
 0x359   :  { %1219 = vadd.xlane.f32.xlu1 %v1218_v9 }
 0x35b   :  { %1270 = vadd.xlane.f32.xlu0 %v1269_v34 }
 0x35d   :  { %1273 = vadd.xlane.f32.xlu1 %v1272_v12 }
 0x35f   :  { %1222 = vadd.xlane.f32.xlu0 %v1221_v42 }
 0x361   :  { %1225 = vadd.xlane.f32.xlu1 %v1224_v18 }
 0x363   :  { %1276 = vadd.xlane.f32.xlu0 %v1275_v50 }
 0x365   :  { %1279 = vadd.xlane.f32.xlu1 %v1278_v51 }
 0x367   :  { %1228 = vadd.xlane.f32.xlu0 %v1227_v57 }
 0x369   :  { %1231 = vadd.xlane.f32.xlu1 %v1230_v10 }
 0x3ab   :  { %v2183_v48 = vpop.f32.mrb[28].mxu1 }
 0x3ac   :  { %v1181_v7 = vpop.f32.mrb[29].mxu1  ;;  %v3222_v3 = vadd.f32 %v2183_v48, %v3075_v39 }
 0x3ad   :  { %v3204_v62 = vadd.f32 %v3075_v39, %v1181_v7  ;;  %v2184_v49 = vpop.f32.mrb[30].mxu1 }
 0x3ae   :  { %v1184_v29 = vpop.f32.mrb[31].mxu1  ;;  %v3227_v14 = vadd.f32 %v2184_v49, %v3075_v39  ;;  %v1287_v0 = vsel %vm1196_vm1, %v3222_v3, 0.0 }
 0x3af   :  { %v3211_v32 = vadd.f32 %v3075_v39, %v1184_v29  ;;  %v1281_v27 = vsel %vm1196_vm1, %v3204_v62, 0.0 }
 0x3b0   :  { %1282 = vadd.xlane.f32.xlu0 %v1281_v27  ;;  %v1290_v11 = vsel %vm1196_vm1, %v3227_v14, 0.0 }
 0x3b1   :  { %v1284_v40 = vsel %vm1196_vm1, %v3211_v32, 0.0 }
 0x3b2   :  { %1285 = vadd.xlane.f32.xlu1 %v1284_v40 }
 0x3b4   :  { %1234 = vadd.xlane.f32.xlu0 %v1233_v46 }
 0x3b6   :  { %1237 = vadd.xlane.f32.xlu1 %v1236_v15 }
 0x3b8   :  { %1288 = vadd.xlane.f32.xlu0 %v1287_v0 }
 0x3ba   :  { %1291 = vadd.xlane.f32.xlu1 %v1290_v11 }
 0x3bc   :  { %1240 = vadd.xlane.f32.xlu0 %v1239_v19 }
 0x3be   :  { %1243 = vadd.xlane.f32.xlu1 %v1242_v58 }
 0x3c8   :  { %v1247_v21 = vpop.xlane.xlu0 %1246 }
 0x3c9   :  { %v1310_v22 = vmul.f32 0.03125, %v1247_v21 }
 0x3ca   :  { %v1250_v24 = vpop.xlane.xlu1 %1249 }
 0x3cb   :  { %v3248_v63 = vsub.f32 %v3078_v45, %v1310_v22  ;;  %v1311_v25 = vmul.f32 0.03125, %v1250_v24 }
 0x3cc   :  { %v1199_v39 = vpop.xlane.xlu0 %1198 }
 0x3cd   :  { %v3251_v28 = vsub.f32 %v3084_v60, %v1311_v25  ;;  %v1294_v13 = vmul.f32 0.03125, %v1199_v39  ;;  %v1374_v35 = vmul.f32 %v3248_v63, %v3248_v63 }
 0x3ce   :  { %v1202_v37 = vpop.xlane.xlu1 %1201 }
 0x3cf   :  { %v3256_v59 = vsub.f32 %v3081_v4, %v1294_v13  ;;  %v1295_v9 = vmul.f32 0.03125, %v1202_v37  ;;  %v1438_v34 = vsel %vm1196_vm1, %v1374_v35, 0.0  ;;  %v1375_v45 = vmul.f32 %v3251_v28, %v3251_v28 }
 0x3d0   :  { %1439 = vadd.xlane.f32.xlu0 %v1438_v34  ;;  %v1253_v12 = vpop.xlane.xlu0 %1252 }
 0x3d1   :  { %v3262_v42 = vsub.f32 %v3089_v47, %v1295_v9  ;;  %v1312_v60 = vmul.f32 0.03125, %v1253_v12  ;;  %v1441_v18 = vsel %vm1196_vm1, %v1375_v45, 0.0  ;;  %v1358_v50 = vmul.f32 %v3256_v59, %v3256_v59 }
 0x3d2   :  { %v1256_v51 = vpop.xlane.xlu1 %1255  ;;  %1442 = vadd.xlane.f32.xlu1 %v1441_v18 }
 0x3d3   :  { %v3268_v4 = vsub.f32 %v3094_v26, %v1312_v60  ;;  %v1313_v57 = vmul.f32 0.03125, %v1256_v51  ;;  %v1390_v10 = vsel %vm1196_vm1, %v1358_v50, 0.0  ;;  %v1359_v48 = vmul.f32 %v3262_v42, %v3262_v42 }
 0x3d4   :  { %1391 = vadd.xlane.f32.xlu0 %v1390_v10  ;;  %v1205_v47 = vpop.xlane.xlu0 %1204 }
 0x3d5   :  { %v3274_v7 = vsub.f32 %v3099_v8, %v1313_v57  ;;  %v1296_v49 = vmul.f32 0.03125, %v1205_v47  ;;  %v1393_v29 = vsel %vm1196_vm1, %v1359_v48, 0.0  ;;  %v1376_v27 = vmul.f32 %v3268_v4, %v3268_v4 }
 0x3d6   :  { %v1208_v40 = vpop.xlane.xlu1 %1207  ;;  %1394 = vadd.xlane.f32.xlu1 %v1393_v29 }
 0x3d7   :  { %v3280_v26 = vsub.f32 %v3104_v6, %v1296_v49  ;;  %v1297_v46 = vmul.f32 0.03125, %v1208_v40  ;;  %v1444_v15 = vsel %vm1196_vm1, %v1376_v27, 0.0  ;;  %v1377_v0 = vmul.f32 %v3274_v7, %v3274_v7 }
 0x3d8   :  { %1445 = vadd.xlane.f32.xlu0 %v1444_v15  ;;  %v1259_v8 = vpop.xlane.xlu0 %1258 }
 0x3d9   :  { %v3286_v11 = vsub.f32 %v3109_v56, %v1297_v46  ;;  %v1314_v19 = vmul.f32 0.03125, %v1259_v8  ;;  %v1447_v58 = vsel %vm1196_vm1, %v1377_v0, 0.0  ;;  %v1360_v21 = vmul.f32 %v3280_v26, %v3280_v26 }
 0x3da   :  { %v1262_v22 = vpop.xlane.xlu1 %1261  ;;  %1448 = vadd.xlane.f32.xlu1 %v1447_v58 }
 0x3db   :  { %v3292_v6 = vsub.f32 %v3114_v61, %v1314_v19  ;;  %v1315_v24 = vmul.f32 0.03125, %v1262_v22  ;;  %v1396_v25 = vsel %vm1196_vm1, %v1360_v21, 0.0  ;;  %v1361_v39 = vmul.f32 %v3286_v11, %v3286_v11 }
 0x3dc   :  { %1397 = vadd.xlane.f32.xlu0 %v1396_v25  ;;  %v1211_v56 = vpop.xlane.xlu0 %1210 }
 0x3dd   :  { %v3298_v13 = vsub.f32 %v3119_v38, %v1315_v24  ;;  %v1298_v35 = vmul.f32 0.03125, %v1211_v56  ;;  %v1399_v37 = vsel %vm1196_vm1, %v1361_v39, 0.0  ;;  %v1378_v9 = vmul.f32 %v3292_v6, %v3292_v6 }
 0x3de   :  { %v1214_v34 = vpop.xlane.xlu1 %1213  ;;  %1400 = vadd.xlane.f32.xlu1 %v1399_v37 }
 0x3df   :  { %v3304_v61 = vsub.f32 %v3124_v5, %v1298_v35  ;;  %v1299_v45 = vmul.f32 0.03125, %v1214_v34  ;;  %v1450_v12 = vsel %vm1196_vm1, %v1378_v9, 0.0  ;;  %v1379_v60 = vmul.f32 %v3298_v13, %v3298_v13 }
 0x3e0   :  { %1451 = vadd.xlane.f32.xlu0 %v1450_v12  ;;  %v1265_v38 = vpop.xlane.xlu0 %1264 }
 0x3e1   :  { %v3310_v18 = vsub.f32 %v3129_v16, %v1299_v45  ;;  %v1316_v50 = vmul.f32 0.03125, %v1265_v38  ;;  %v1453_v51 = vsel %vm1196_vm1, %v1379_v60, 0.0  ;;  %v1362_v57 = vmul.f32 %v3304_v61, %v3304_v61 }
 0x3e2   :  { %v1268_v10 = vpop.xlane.xlu1 %1267  ;;  %1454 = vadd.xlane.f32.xlu1 %v1453_v51 }
 0x3e3   :  { %v3316_v5 = vsub.f32 %v3134_v43, %v1316_v50  ;;  %v1317_v48 = vmul.f32 0.03125, %v1268_v10  ;;  %v1402_v47 = vsel %vm1196_vm1, %v1362_v57, 0.0  ;;  %v1363_v49 = vmul.f32 %v3310_v18, %v3310_v18 }
 0x3e4   :  { %1403 = vadd.xlane.f32.xlu0 %v1402_v47  ;;  %v1217_v16 = vpop.xlane.xlu0 %1216 }
 0x3e5   :  { %v3322_v29 = vsub.f32 %v3139_v53, %v1317_v48  ;;  %v1300_v27 = vmul.f32 0.03125, %v1217_v16  ;;  %v1405_v40 = vsel %vm1196_vm1, %v1363_v49, 0.0  ;;  %v1380_v46 = vmul.f32 %v3316_v5, %v3316_v5 }
 0x3e6   :  { %v1220_v15 = vpop.xlane.xlu1 %1219  ;;  %1406 = vadd.xlane.f32.xlu1 %v1405_v40 }
 0x3e7   :  { %v3328_v43 = vsub.f32 %v3145_v20, %v1300_v27  ;;  %v1301_v0 = vmul.f32 0.03125, %v1220_v15  ;;  %v1456_v8 = vsel %vm1196_vm1, %v1380_v46, 0.0  ;;  %v1381_v19 = vmul.f32 %v3322_v29, %v3322_v29 }
 0x3e8   :  { %1457 = vadd.xlane.f32.xlu0 %v1456_v8  ;;  %v1271_v53 = vpop.xlane.xlu0 %1270 }
 0x3e9   :  { %v3334_v58 = vsub.f32 %v3151_v23, %v1301_v0  ;;  %v1318_v21 = vmul.f32 0.03125, %v1271_v53  ;;  %v1459_v22 = vsel %vm1196_vm1, %v1381_v19, 0.0  ;;  %v1364_v24 = vmul.f32 %v3328_v43, %v3328_v43 }
 0x3ea   :  { %v1274_v25 = vpop.xlane.xlu1 %1273  ;;  %1460 = vadd.xlane.f32.xlu1 %v1459_v22 }
 0x3eb   :  { %v3340_v20 = vsub.f32 %v3156_v17, %v1318_v21  ;;  %v1319_v39 = vmul.f32 0.03125, %v1274_v25  ;;  %v1408_v56 = vsel %vm1196_vm1, %v1364_v24, 0.0  ;;  %v1365_v35 = vmul.f32 %v3334_v58, %v3334_v58 }
 0x3ec   :  { %1409 = vadd.xlane.f32.xlu0 %v1408_v56  ;;  %v1223_v23 = vpop.xlane.xlu0 %1222 }
 0x3ed   :  { %v3346_v37 = vsub.f32 %v3161_v31, %v1319_v39  ;;  %v1302_v9 = vmul.f32 0.03125, %v1223_v23  ;;  %v1411_v34 = vsel %vm1196_vm1, %v1365_v35, 0.0  ;;  %v1382_v45 = vmul.f32 %v3340_v20, %v3340_v20 }
 0x3ee   :  { %v1226_v12 = vpop.xlane.xlu1 %1225  ;;  %1412 = vadd.xlane.f32.xlu1 %v1411_v34 }
 0x3ef   :  { %v3352_v17 = vsub.f32 %v3167_v30, %v1302_v9  ;;  %v1303_v60 = vmul.f32 0.03125, %v1226_v12  ;;  %v1462_v38 = vsel %vm1196_vm1, %v1382_v45, 0.0  ;;  %v1383_v50 = vmul.f32 %v3346_v37, %v3346_v37 }
 0x3f0   :  { %1463 = vadd.xlane.f32.xlu0 %v1462_v38  ;;  %v1277_v31 = vpop.xlane.xlu0 %1276 }
 0x3f1   :  { %v3358_v51 = vsub.f32 %v3173_v33, %v1303_v60  ;;  %v1320_v57 = vmul.f32 0.03125, %v1277_v31  ;;  %v1465_v10 = vsel %vm1196_vm1, %v1383_v50, 0.0  ;;  %v1366_v48 = vmul.f32 %v3352_v17, %v3352_v17 }
 0x3f2   :  { %v1280_v47 = vpop.xlane.xlu1 %1279  ;;  %1466 = vadd.xlane.f32.xlu1 %v1465_v10 }
 0x3f3   :  { %v3364_v30 = vsub.f32 %v3178_v52, %v1320_v57  ;;  %v1321_v49 = vmul.f32 0.03125, %v1280_v47  ;;  %v1414_v16 = vsel %vm1196_vm1, %v1366_v48, 0.0  ;;  %v1367_v27 = vmul.f32 %v3358_v51, %v3358_v51 }
 0x3f4   :  { %1415 = vadd.xlane.f32.xlu0 %v1414_v16  ;;  %v1229_v33 = vpop.xlane.xlu0 %1228 }
 0x3f5   :  { %v3370_v40 = vsub.f32 %v3183_v44, %v1321_v49  ;;  %v1304_v46 = vmul.f32 0.03125, %v1229_v33  ;;  %v1417_v15 = vsel %vm1196_vm1, %v1367_v27, 0.0  ;;  %v1384_v0 = vmul.f32 %v3364_v30, %v3364_v30 }
 0x3f6   :  { %v1232_v8 = vpop.xlane.xlu1 %1231  ;;  %1418 = vadd.xlane.f32.xlu1 %v1417_v15 }
 0x3f7   :  { %v3376_v52 = vsub.f32 %v3189_v1, %v1304_v46  ;;  %v1305_v19 = vmul.f32 0.03125, %v1232_v8  ;;  %v1468_v53 = vsel %vm1196_vm1, %v1384_v0, 0.0  ;;  %v1385_v21 = vmul.f32 %v3370_v40, %v3370_v40 }
 0x3f8   :  { %1469 = vadd.xlane.f32.xlu0 %v1468_v53 }
 0x3f9   :  { %v3382_v44 = vsub.f32 %v3195_v55, %v1305_v19  ;;  %v1471_v22 = vsel %vm1196_vm1, %v1385_v21, 0.0  ;;  %v1368_v24 = vmul.f32 %v3376_v52, %v3376_v52 }
 0x3fa   :  { %1472 = vadd.xlane.f32.xlu1 %v1471_v22 }
 0x3fb   :  { %v1420_v25 = vsel %vm1196_vm1, %v1368_v24, 0.0  ;;  %v1369_v1 = vmul.f32 %v3382_v44, %v3382_v44 }
 0x3fc   :  { %1421 = vadd.xlane.f32.xlu0 %v1420_v25 }
 0x3fd   :  { %v1423_v39 = vsel %vm1196_vm1, %v1369_v1, 0.0 }
 0x3fe   :  { %1424 = vadd.xlane.f32.xlu1 %v1423_v39 }
 0x43d   :  { %v1283_v56 = vpop.xlane.xlu0 %1282 }
 0x43e   :  { %v1322_v35 = vmul.f32 0.03125, %v1283_v56 }
 0x43f   :  { %v1286_v23 = vpop.xlane.xlu1 %1285 }
 0x440   :  { %v3392_v55 = vsub.f32 %v3204_v62, %v1322_v35  ;;  %v1323_v9 = vmul.f32 0.03125, %v1286_v23 }
 0x441   :  { %v1235_v34 = vpop.xlane.xlu0 %1234 }
 0x442   :  { %v3395_v45 = vsub.f32 %v3211_v32, %v1323_v9  ;;  %v1306_v12 = vmul.f32 0.03125, %v1235_v34  ;;  %v1386_v60 = vmul.f32 %v3392_v55, %v3392_v55 }
 0x443   :  { %v1238_v38 = vpop.xlane.xlu1 %1237 }
 0x444   :  { %v3400_v50 = vsub.f32 %v3208_v36, %v1306_v12  ;;  %v1307_v31 = vmul.f32 0.03125, %v1238_v38  ;;  %v1474_v57 = vsel %vm1196_vm1, %v1386_v60, 0.0  ;;  %v1387_v62 = vmul.f32 %v3395_v45, %v3395_v45 }
 0x445   :  { %1475 = vadd.xlane.f32.xlu0 %v1474_v57  ;;  %v1289_v10 = vpop.xlane.xlu0 %1288 }
 0x446   :  { %v3406_v48 = vsub.f32 %v3217_v2, %v1307_v31  ;;  %v1324_v32 = vmul.f32 0.03125, %v1289_v10  ;;  %v1477_v47 = vsel %vm1196_vm1, %v1387_v62, 0.0  ;;  %v1370_v49 = vmul.f32 %v3400_v50, %v3400_v50 }
 0x447   :  { %1478 = vadd.xlane.f32.xlu1 %v1477_v47  ;;  %v1292_v36 = vpop.xlane.xlu1 %1291 }
 0x448   :  { %v3412_v16 = vsub.f32 %v3222_v3, %v1324_v32  ;;  %v1325_v27 = vmul.f32 0.03125, %v1292_v36  ;;  %v1426_v33 = vsel %vm1196_vm1, %v1370_v49, 0.0  ;;  %v1371_v46 = vmul.f32 %v3406_v48, %v3406_v48 }
 0x449   :  { %1427 = vadd.xlane.f32.xlu0 %v1426_v33  ;;  %v1241_v2 = vpop.xlane.xlu0 %1240 }
 0x44a   :  { %v3418_v15 = vsub.f32 %v3227_v14, %v1325_v27  ;;  %v1308_v0 = vmul.f32 0.03125, %v1241_v2  ;;  %v1429_v8 = vsel %vm1196_vm1, %v1371_v46, 0.0  ;;  %v1388_v19 = vmul.f32 %v3412_v16, %v3412_v16 }
 0x44b   :  { %1430 = vadd.xlane.f32.xlu1 %v1429_v8  ;;  %v1244_v3 = vpop.xlane.xlu1 %1243 }
 0x44c   :  { %v3424_v53 = vsub.f32 %v3233_v41, %v1308_v0  ;;  %v1309_v21 = vmul.f32 0.03125, %v1244_v3  ;;  %v1480_v22 = vsel %vm1196_vm1, %v1388_v19, 0.0  ;;  %v1389_v24 = vmul.f32 %v3418_v15, %v3418_v15  ;;  %v3442_v19 = vld [vmem:[%s3611_s7] ss:$0 sm:$0xff] }
 0x44d   :  { %1481 = vadd.xlane.f32.xlu0 %v1480_v22 }
 0x44e   :  { %v3430_v14 = vsub.f32 %v3239_v54, %v1309_v21  ;;  %v1483_v25 = vsel %vm1196_vm1, %v1389_v24, 0.0  ;;  %v1372_v1 = vmul.f32 %v3424_v53, %v3424_v53 }
 0x44f   :  { %1484 = vadd.xlane.f32.xlu1 %v1483_v25 }
 0x450   :  { %v1432_v39 = vsel %vm1196_vm1, %v1372_v1, 0.0  ;;  %v1373_v41 = vmul.f32 %v3430_v14, %v3430_v14 }
 0x451   :  { %1433 = vadd.xlane.f32.xlu0 %v1432_v39 }
 0x452   :  { %v1435_v56 = vsel %vm1196_vm1, %v1373_v41, 0.0  ;;  %v3448_v41 = vld [vmem:[%s3612_s8] ss:$0 sm:$0xff] }
 0x453   :  { %1436 = vadd.xlane.f32.xlu1 %v1435_v56 }
 0x45d   :  { %v1440_v35 = vpop.xlane.xlu0 %1439 }
 0x45e   :  { %v1502_v23 = vmul.f32 0.03125, %v1440_v35 }
 0x45f   :  { %v1443_v9 = vpop.xlane.xlu1 %1442 }
 0x460   :  { %v1534_v54 = vadd.f32 1e-05, %v1502_v23  ;;  %v1503_v34 = vmul.f32 0.03125, %v1443_v9 }
 0x461   :  { %v1392_v12 = vpop.xlane.xlu0 %1391 }
 0x462   :  { %2328 = vrsqrt.f32 %v1534_v54  ;;  %v1535_v60 = vadd.f32 1e-05, %v1503_v34  ;;  %v1486_v38 = vmul.f32 0.03125, %v1392_v12 }
 0x463   :  { %v1395_v31 = vpop.xlane.xlu1 %1394 }
 0x464   :  { %2330 = vrsqrt.f32 %v1535_v60  ;;  %v1518_v57 = vadd.f32 1e-05, %v1486_v38  ;;  %v1487_v62 = vmul.f32 0.03125, %v1395_v31 }
 0x465   :  { %v1446_v10 = vpop.xlane.xlu0 %1445 }
 0x466   :  { %2332 = vrsqrt.f32 %v1518_v57  ;;  %v1519_v32 = vadd.f32 1e-05, %v1487_v62  ;;  %v1504_v47 = vmul.f32 0.03125, %v1446_v10 }
 0x467   :  { %v1449_v49 = vpop.xlane.xlu1 %1448 }
 0x468   :  { %2334 = vrsqrt.f32 %v1519_v32  ;;  %v1536_v36 = vadd.f32 1e-05, %v1504_v47  ;;  %v1505_v27 = vmul.f32 0.03125, %v1449_v49 }
 0x469   :  { %v1398_v33 = vpop.xlane.xlu0 %1397 }
 0x46a   :  { %2336 = vrsqrt.f32 %v1536_v36  ;;  %v1537_v46 = vadd.f32 1e-05, %v1505_v27  ;;  %v1488_v2 = vmul.f32 0.03125, %v1398_v33 }
 0x46b   :  { %v1401_v0 = vpop.xlane.xlu1 %1400 }
 0x46c   :  { %v2329_v8 = vpop.eup %2328  ;;  %2338 = vrsqrt.f32 %v1537_v46  ;;  %v1520_v3 = vadd.f32 1e-05, %v1488_v2  ;;  %v1489_v21 = vmul.f32 0.03125, %v1401_v0 }
 0x46d   :  { %v1598_v22 = vmul.f32 %v2329_v8, %v3248_v63  ;;  %v1452_v24 = vpop.xlane.xlu0 %1451 }
 0x46e   :  { %v2331_v25 = vpop.eup %2330  ;;  %2340 = vrsqrt.f32 %v1520_v3  ;;  %v1521_v1 = vadd.f32 1e-05, %v1489_v21  ;;  %v1506_v39 = vmul.f32 0.03125, %v1452_v24 }
 0x46f   :  { %v1599_v56 = vmul.f32 %v2331_v25, %v3251_v28  ;;  %v1455_v35 = vpop.xlane.xlu1 %1454  ;;  %v1636_v23 = vmul.f32 %v3442_v19, %v1598_v22 }
 0x470   :  { %v2333_v9 = vpop.eup %2332  ;;  %2342 = vrsqrt.f32 %v1521_v1  ;;  %v1538_v54 = vadd.f32 1e-05, %v1506_v39  ;;  %v1507_v34 = vmul.f32 0.03125, %v1455_v35 }
 0x471   :  { %v1582_v63 = vmul.f32 %v2333_v9, %v3256_v59  ;;  %v1404_v12 = vpop.xlane.xlu0 %1403  ;;  %v1637_v60 = vmul.f32 %v3442_v19, %v1599_v56  ;;  %v1674_v38 = vadd.f32 %v3448_v41, %v1636_v23 }
 0x472   :  { %v2335_v31 = vpop.eup %2334  ;;  %2344 = vrsqrt.f32 %v1538_v54  ;;  %v1539_v57 = vadd.f32 1e-05, %v1507_v34  ;;  %v1490_v62 = vmul.f32 0.03125, %v1404_v12 }
 0x473   :  { %v1620_v28 = vmul.f32 %v3442_v19, %v1582_v63  ;;  %v1583_v10 = vmul.f32 %v2335_v31, %v3262_v42  ;;  %v1407_v32 = vpop.xlane.xlu1 %1406  ;;  %v1675_v47 = vadd.f32 %v3448_v41, %v1637_v60  ;;  %v1706_v27 = vmax.f32 %v1674_v38, 0.0 }
 0x474   :  { %v2337_v49 = vpop.eup %2336  ;;  %2346 = vrsqrt.f32 %v1539_v57  ;;  %v1522_v36 = vadd.f32 1e-05, %v1490_v62  ;;  %v1491_v59 = vmul.f32 0.03125, %v1407_v32  ;;  %v3478_v57 = vld [vmem:[%s3613_s9] sm:$0xff]  ;;  %s2425_s9 = smov [#allocation3]  }
 0x475   :  { %v1621_v33 = vmul.f32 %v3442_v19, %v1583_v10  ;;  %v1600_v46 = vmul.f32 %v2337_v49, %v3268_v4  ;;  %v1458_v2 = vpop.xlane.xlu0 %1457  ;;  %v1707_v0 = vmax.f32 %v1675_v47, 0.0  ;;  %v1658_v8 = vadd.f32 %v3448_v41, %v1620_v28  ;;  %2095 = vmatprep.mubr.msk.f32.mxu1 %vm1196_vm1, %v3478_v57  ;;  %s1926_s19 = sshll.u32 %s2425_s9, 4  ;;  %s1927_s19 = int_to_ptr.vmem [resolvable:$true] %s1926_s19 }
 0x476   :  { %v2339_v3 = vpop.eup %2338  ;;  %2348 = vrsqrt.f32 %v1522_v36  ;;  %v1523_v21 = vadd.f32 1e-05, %v1491_v59  ;;  %v1508_v42 = vmul.f32 0.03125, %v1458_v2  ;;  %s2400_s20 = scalar_lea.vmem %s1927_s19, 16  ;;  %s2404_s21 = scalar_lea.vmem %s1927_s19, 32 }
 0x477   :  { %v1601_v24 = vmul.f32 %v2339_v3, %v3274_v7  ;;  %v1461_v25 = vpop.xlane.xlu1 %1460  ;;  %v2185_v1 = vpack.c.bf16 %v1707_v0, %v1706_v27  ;;  %v1659_v4 = vadd.f32 %v3448_v41, %v1621_v33  ;;  %v1638_v23 = vmul.f32 %v3442_v19, %v1600_v46  ;;  %p2401_p0 = scmp.ne.s32.totalorder %s1927_s19, %s2400_s20  ;;  %p2405_p1 = scmp.lt.s32.totalorder %s1927_s19, %s1927_s19 }
 0x478   :  { %v2341_v39 = vpop.eup %2340  ;;  %2350 = vrsqrt.f32 %v1523_v21  ;;  %v1540_v56 = vadd.f32 1e-05, %v1508_v42  ;;  %v1509_v35 = vmul.f32 0.03125, %v1461_v25  ;;  %v1690_v34 = vmax.f32 %v1658_v8, 0.0  ;;  %p2406_p2 = scmp.lt.s32.totalorder %s2404_s21, %s2400_s20 }
 0x479   :  { %v1584_v9 = vmul.f32 %v2341_v39, %v3280_v26  ;;  %2187 = vmatprep.subr.msk.bf16.mxu1 %vm3463_vm2, %v2185_v1  ;;  %v1410_v54 = vpop.xlane.xlu0 %1409  ;;  %v1691_v63 = vmax.f32 %v1659_v4, 0.0  ;;  %v1639_v7 = vmul.f32 %v3442_v19, %v1601_v24  ;;  %v1676_v31 = vadd.f32 %v3448_v41, %v1638_v23 }
 0x47a   :  { %v2343_v12 = vpop.eup %2342  ;;  %2352 = vrsqrt.f32 %v1540_v56  ;;  %v1541_v60 = vadd.f32 1e-05, %v1509_v35  ;;  %v1492_v38 = vmul.f32 0.03125, %v1410_v54  ;;  %v1723_v54 = vld [vmem:[#allocation2] sm:$0x1]  ;;  %p2407_p3 = por %p2406_p2, %p2405_p1 }
 0x47b   :  { %v1622_v26 = vmul.f32 %v3442_v19, %v1584_v9  ;;  %v1585_v62 = vmul.f32 %v2343_v12, %v3286_v11  ;;  %v1413_v28 = vpop.xlane.xlu1 %1412  ;;  %v2188_v10 = vpack.c.bf16 %v1691_v63, %v1690_v34  ;;  %v1677_v32 = vadd.f32 %v3448_v41, %v1639_v7 }
 0x47c   :  { %v2345_v47 = vpop.eup %2344  ;;  %2354 = vrsqrt.f32 %v1541_v60  ;;  %v1524_v49 = vadd.f32 1e-05, %v1492_v38  ;;  %v1493_v36 = vmul.f32 0.03125, %v1413_v28  ;;  %v1708_v59 = vmax.f32 %v1676_v31, 0.0  ;;  %p2408_p4 = pnand %p2407_p3, %p2401_p0 }
 0x47d   :  { %v1623_v27 = vmul.f32 %v3442_v19, %v1585_v62  ;;  %v1602_v33 = vmul.f32 %v2345_v47, %v3292_v6  ;;  %2190 = vmatpush3.bf16.xpose.msk.msra.mxu1 %vm3463_vm2, %v2188_v10  ;;  %v1464_v11 = vpop.xlane.xlu0 %1463  ;;  %v1709_v46 = vmax.f32 %v1677_v32, 0.0  ;;  %v1660_v2 = vadd.f32 %v3448_v41, %v1622_v26 }
 0x47e   :  { %v2347_v0 = vpop.eup %2346  ;;  %2356 = vrsqrt.f32 %v1524_v49  ;;  %v1525_v8 = vadd.f32 1e-05, %v1493_v36  ;;  %v1510_v3 = vmul.f32 0.03125, %v1464_v11  ;;  %v2424_v60 = vmov 0  }
 0x47f   :  { %v1603_v21 = vmul.f32 %v2347_v0, %v3298_v13  ;;  %v1467_v42 = vpop.xlane.xlu1 %1466  ;;  %v2191_v24 = vpack.c.bf16 %v1709_v46, %v1708_v59  ;;  %v1661_v25 = vadd.f32 %v3448_v41, %v1623_v27  ;;  %v1692_v1 = vmax.f32 %v1660_v2, 0.0  ;;  %2235 = vset.pattern.permute.xlu0 %v2424_v60 }
 0x480   :  { %v2349_v4 = vpop.eup %2348  ;;  %2358 = vrsqrt.f32 %v1525_v8  ;;  %v1542_v6 = vadd.f32 1e-05, %v1510_v3  ;;  %v1511_v39 = vmul.f32 0.03125, %v1467_v42  ;;  %v1640_v56 = vmul.f32 %v3442_v19, %v1602_v33  ;;  %1896 = vperm.xlu0 %2235, %v1723_v54  }
 0x481   :  { %v1586_v35 = vmul.f32 %v2349_v4, %v3304_v61  ;;  %2193 = vmatprep.subr.msk.bf16.mxu1 %vm3463_vm2, %v2191_v24  ;;  %v1416_v23 = vpop.xlane.xlu0 %1415  ;;  %v1693_v9 = vmax.f32 %v1661_v25, 0.0  ;;  %v1641_v13 = vmul.f32 %v3442_v19, %v1603_v21 }
 0x482   :  { %v2351_v34 = vpop.eup %2350  ;;  %2360 = vrsqrt.f32 %v1542_v6  ;;  %v1543_v63 = vadd.f32 1e-05, %v1511_v39  ;;  %v1494_v7 = vmul.f32 0.03125, %v1416_v23  ;;  %v1678_v12 = vadd.f32 %v3448_v41, %v1640_v56 }
 0x483   :  { %v1624_v38 = vmul.f32 %v3442_v19, %v1586_v35  ;;  %v1587_v61 = vmul.f32 %v2351_v34, %v3310_v18  ;;  %v1419_v31 = vpop.xlane.xlu1 %1418  ;;  %v2194_v26 = vpack.c.bf16 %v1693_v9, %v1692_v1  ;;  %v1679_v62 = vadd.f32 %v3448_v41, %v1641_v13 }
 0x484   :  { %v2353_v28 = vpop.eup %2352  ;;  %2362 = vrsqrt.f32 %v1543_v63  ;;  %v1526_v10 = vadd.f32 1e-05, %v1494_v7  ;;  %v1495_v32 = vmul.f32 0.03125, %v1419_v31  ;;  %v1710_v47 = vmax.f32 %v1678_v12, 0.0 }
 0x485   :  { %v1625_v49 = vmul.f32 %v3442_v19, %v1587_v61  ;;  %v1604_v36 = vmul.f32 %v2353_v28, %v3316_v5  ;;  %2196 = vmatpush3.bf16.xpose.msk.msra.mxu1 %vm3463_vm2, %v2194_v26  ;;  %v1470_v59 = vpop.xlane.xlu0 %1469  ;;  %v1711_v27 = vmax.f32 %v1679_v62, 0.0  ;;  %v1662_v18 = vadd.f32 %v3448_v41, %v1624_v38 }
 0x486   :  { %v2355_v33 = vpop.eup %2354  ;;  %2364 = vrsqrt.f32 %v1526_v10  ;;  %v1527_v11 = vadd.f32 1e-05, %v1495_v32  ;;  %v1512_v46 = vmul.f32 0.03125, %v1470_v59 }
 0x487   :  { %v1605_v2 = vmul.f32 %v2355_v33, %v3322_v29  ;;  %v1473_v0 = vpop.xlane.xlu1 %1472  ;;  %v2197_v8 = vpack.c.bf16 %v1711_v27, %v1710_v47  ;;  %v1663_v3 = vadd.f32 %v3448_v41, %v1625_v49  ;;  %v1642_v24 = vmul.f32 %v3442_v19, %v1604_v36 }
 0x488   :  { %v2357_v21 = vpop.eup %2356  ;;  %2366 = vrsqrt.f32 %v1527_v11  ;;  %v1544_v5 = vadd.f32 1e-05, %v1512_v46  ;;  %v1513_v42 = vmul.f32 0.03125, %v1473_v0  ;;  %v1694_v4 = vmax.f32 %v1662_v18, 0.0 }
 0x489   :  { %v1588_v25 = vmul.f32 %v2357_v21, %v3328_v43  ;;  %2199 = vmatprep.subr.msk.bf16.mxu1 %vm3463_vm2, %v2197_v8  ;;  %v1422_v1 = vpop.xlane.xlu0 %1421  ;;  %v1695_v6 = vmax.f32 %v1663_v3, 0.0  ;;  %v1643_v29 = vmul.f32 %v3442_v19, %v1605_v2  ;;  %v1680_v23 = vadd.f32 %v3448_v41, %v1642_v24 }
 0x48a   :  { %v2359_v39 = vpop.eup %2358  ;;  %2368 = vrsqrt.f32 %v1544_v5  ;;  %v1545_v56 = vadd.f32 1e-05, %v1513_v42  ;;  %v1496_v35 = vmul.f32 0.03125, %v1422_v1 }
 0x48b   :  { %v1626_v9 = vmul.f32 %v3442_v19, %v1588_v25  ;;  %v1589_v13 = vmul.f32 %v2359_v39, %v3334_v58  ;;  %v1425_v54 = vpop.xlane.xlu1 %1424  ;;  %v2200_v43 = vpack.c.bf16 %v1695_v6, %v1694_v4  ;;  %v1681_v34 = vadd.f32 %v3448_v41, %v1643_v29 }
 0x48c   :  { %v2361_v63 = vpop.eup %2360  ;;  %2370 = vrsqrt.f32 %v1545_v56  ;;  %v1528_v7 = vadd.f32 1e-05, %v1496_v35  ;;  %v1497_v12 = vmul.f32 0.03125, %v1425_v54  ;;  %v1712_v60 = vmax.f32 %v1680_v23, 0.0 }
 0x48d   :  { %v1627_v38 = vmul.f32 %v3442_v19, %v1589_v13  ;;  %v1606_v61 = vmul.f32 %v2361_v63, %v3340_v20  ;;  %2202 = vmatpush3.bf16.xpose.msk.msra.mxu1 %vm3463_vm2, %v2200_v43  ;;  %v1713_v31 = vmax.f32 %v1681_v34, 0.0  ;;  %v1664_v26 = vadd.f32 %v3448_v41, %v1626_v9 }
 0x48e   :  { %v2363_v58 = vpop.eup %2362  ;;  %2372 = vrsqrt.f32 %v1528_v7  ;;  %v1529_v62 = vadd.f32 1e-05, %v1497_v12 }
 0x48f   :  { %v1607_v28 = vmul.f32 %v2363_v58, %v3346_v37  ;;  %v2203_v10 = vpack.c.bf16 %v1713_v31, %v1712_v60  ;;  %v1665_v32 = vadd.f32 %v3448_v41, %v1627_v38  ;;  %v1644_v49 = vmul.f32 %v3442_v19, %v1606_v61 }
 0x490   :  { %v2365_v47 = vpop.eup %2364  ;;  %2374 = vrsqrt.f32 %v1529_v62  ;;  %v1696_v36 = vmax.f32 %v1664_v26, 0.0 }
 0x491   :  { %v1590_v20 = vmul.f32 %v2365_v47, %v3352_v17  ;;  %2205 = vmatprep.subr.msk.bf16.mxu1 %vm3463_vm2, %v2203_v10  ;;  %v1697_v59 = vmax.f32 %v1665_v32, 0.0  ;;  %v1645_v27 = vmul.f32 %v3442_v19, %v1607_v28  ;;  %v1682_v33 = vadd.f32 %v3448_v41, %v1644_v49 }
 0x492   :  { %v2367_v18 = vpop.eup %2366 }
 0x493   :  { %v1628_v37 = vmul.f32 %v3442_v19, %v1590_v20  ;;  %v1591_v11 = vmul.f32 %v2367_v18, %v3358_v51  ;;  %v2206_v46 = vpack.c.bf16 %v1697_v59, %v1696_v36  ;;  %v1683_v2 = vadd.f32 %v3448_v41, %v1645_v27 }
 0x494   :  { %v2369_v0 = vpop.eup %2368  ;;  %v1714_v8 = vmax.f32 %v1682_v33, 0.0 }
 0x495   :  { %v1629_v17 = vmul.f32 %v3442_v19, %v1591_v11  ;;  %v1608_v3 = vmul.f32 %v2369_v0, %v3364_v30  ;;  %2208 = vmatpush3.bf16.xpose.msk.msra.mxu1 %vm3463_vm2, %v2206_v46  ;;  %v1715_v21 = vmax.f32 %v1683_v2, 0.0  ;;  %v1666_v5 = vadd.f32 %v3448_v41, %v1628_v37 }
 0x496   :  { %v2371_v42 = vpop.eup %2370 }
 0x497   :  { %v1609_v24 = vmul.f32 %v2371_v42, %v3370_v40  ;;  %v2209_v25 = vpack.c.bf16 %v1715_v21, %v1714_v8  ;;  %v1667_v51 = vadd.f32 %v3448_v41, %v1629_v17  ;;  %v1646_v4 = vmul.f32 %v3442_v19, %v1608_v3 }
 0x498   :  { %v2373_v1 = vpop.eup %2372  ;;  %v1698_v30 = vmax.f32 %v1666_v5, 0.0 }
 0x499   :  { %v1592_v6 = vmul.f32 %v2373_v1, %v3376_v52  ;;  %2211 = vmatprep.subr.msk.bf16.mxu1 %vm3463_vm2, %v2209_v25  ;;  %v1699_v29 = vmax.f32 %v1667_v51, 0.0  ;;  %v1647_v39 = vmul.f32 %v3442_v19, %v1609_v24  ;;  %v1684_v35 = vadd.f32 %v3448_v41, %v1646_v4 }
 0x49a   :  { %v2375_v56 = vpop.eup %2374 }
 0x49b   :  { %v1630_v40 = vmul.f32 %v3442_v19, %v1592_v6  ;;  %v1593_v23 = vmul.f32 %v2375_v56, %v3382_v44  ;;  %v2212_v9 = vpack.c.bf16 %v1699_v29, %v1698_v30  ;;  %v1685_v13 = vadd.f32 %v3448_v41, %v1647_v39 }
 0x49c   :  { %v1716_v52 = vmax.f32 %v1684_v35, 0.0 }
 0x49d   :  { %v1631_v54 = vmul.f32 %v3442_v19, %v1593_v23  ;;  %2214 = vmatpush3.bf16.xpose.msk.msra.mxu1 %vm3463_vm2, %v2212_v9  ;;  %v1717_v43 = vmax.f32 %v1685_v13, 0.0  ;;  %v1668_v34 = vadd.f32 %v3448_v41, %v1630_v40 }
 0x49f   :  { %v2215_v63 = vpack.c.bf16 %v1717_v43, %v1716_v52  ;;  %v1669_v7 = vadd.f32 %v3448_v41, %v1631_v54  ;;  %v1700_v12 = vmax.f32 %v1668_v34, 0.0 }
 0x4a1   :  { %2217 = vmatprep.subr.msk.bf16.mxu1 %vm3463_vm2, %v2215_v63  ;;  %v1701_v44 = vmax.f32 %v1669_v7, 0.0 }
 0x4a3   :  { %v2218_v60 = vpack.c.bf16 %v1701_v44, %v1700_v12 }
 0x4a5   :  { %2220 = vmatpush3.bf16.xpose.msk.msra.mxu1 %vm3463_vm2, %v2218_v60 }
 0x4d2   :  { %v1476_v38 = vpop.xlane.xlu0 %1475 }
 0x4d3   :  { %v1514_v61 = vmul.f32 0.03125, %v1476_v38 }
 0x4d4   :  { %v1479_v31 = vpop.xlane.xlu1 %1478 }
 0x4d5   :  { %v1546_v26 = vadd.f32 1e-05, %v1514_v61  ;;  %v1515_v58 = vmul.f32 0.03125, %v1479_v31 }
 0x4d6   :  { %v1428_v62 = vpop.xlane.xlu0 %1427 }
 0x4d7   :  { %2376 = vrsqrt.f32 %v1546_v26  ;;  %v1547_v28 = vadd.f32 1e-05, %v1515_v58  ;;  %v1498_v10 = vmul.f32 0.03125, %v1428_v62 }
 0x4d8   :  { %v1431_v32 = vpop.xlane.xlu1 %1430 }
 0x4d9   :  { %2378 = vrsqrt.f32 %v1547_v28  ;;  %v1530_v47 = vadd.f32 1e-05, %v1498_v10  ;;  %v1499_v49 = vmul.f32 0.03125, %v1431_v32 }
 0x4da   :  { %v1482_v20 = vpop.xlane.xlu0 %1481 }
 0x4db   :  { %2380 = vrsqrt.f32 %v1530_v47  ;;  %v1531_v36 = vadd.f32 1e-05, %v1499_v49  ;;  %v1516_v59 = vmul.f32 0.03125, %v1482_v20 }
 0x4dc   :  { %v1485_v27 = vpop.xlane.xlu1 %1484 }
 0x4dd   :  { %2382 = vrsqrt.f32 %v1531_v36  ;;  %v1548_v18 = vadd.f32 1e-05, %v1516_v59  ;;  %v1517_v33 = vmul.f32 0.03125, %v1485_v27 }
 0x4de   :  { %v1434_v37 = vpop.xlane.xlu0 %1433 }
 0x4df   :  { %2384 = vrsqrt.f32 %v1548_v18  ;;  %v1549_v11 = vadd.f32 1e-05, %v1517_v33  ;;  %v1500_v46 = vmul.f32 0.03125, %v1434_v37 }
 0x4e0   :  { %v1437_v2 = vpop.xlane.xlu1 %1436 }
 0x4e1   :  { %v2377_v0 = vpop.eup %2376  ;;  %2386 = vrsqrt.f32 %v1549_v11  ;;  %v1532_v8 = vadd.f32 1e-05, %v1500_v46  ;;  %v1501_v17 = vmul.f32 0.03125, %v1437_v2 }
 0x4e2   :  { %v1610_v3 = vmul.f32 %v2377_v0, %v3392_v55 }
 0x4e3   :  { %v2379_v21 = vpop.eup %2378  ;;  %2388 = vrsqrt.f32 %v1532_v8  ;;  %v1533_v5 = vadd.f32 1e-05, %v1501_v17 }
 0x4e4   :  { %v1611_v42 = vmul.f32 %v2379_v21, %v3395_v45  ;;  %v1648_v24 = vmul.f32 %v3442_v19, %v1610_v3 }
 0x4e5   :  { %v2381_v25 = vpop.eup %2380  ;;  %2390 = vrsqrt.f32 %v1533_v5 }
 0x4e6   :  { %v1594_v51 = vmul.f32 %v2381_v25, %v3400_v50  ;;  %v1649_v1 = vmul.f32 %v3442_v19, %v1611_v42  ;;  %v1686_v4 = vadd.f32 %v3448_v41, %v1648_v24 }
 0x4e7   :  { %v2383_v6 = vpop.eup %2382 }
 0x4e8   :  { %v1632_v30 = vmul.f32 %v3442_v19, %v1594_v51  ;;  %v1595_v55 = vmul.f32 %v2383_v6, %v3406_v48  ;;  %v1687_v29 = vadd.f32 %v3448_v41, %v1649_v1  ;;  %v1718_v56 = vmax.f32 %v1686_v4, 0.0 }
 0x4e9   :  { %v2385_v39 = vpop.eup %2384 }
 0x4ea   :  { %v1633_v45 = vmul.f32 %v3442_v19, %v1595_v55  ;;  %v1612_v35 = vmul.f32 %v2385_v39, %v3412_v16  ;;  %v1719_v40 = vmax.f32 %v1687_v29, 0.0  ;;  %v1670_v50 = vadd.f32 %v3448_v41, %v1632_v30 }
 0x4eb   :  { %v2387_v23 = vpop.eup %2386 }
 0x4ec   :  { %v1613_v9 = vmul.f32 %v2387_v23, %v3418_v15  ;;  %v2221_v13 = vpack.c.bf16 %v1719_v40, %v1718_v56  ;;  %v1671_v54 = vadd.f32 %v3448_v41, %v1633_v45  ;;  %v1650_v48 = vmul.f32 %v3442_v19, %v1612_v35 }
 0x4ed   :  { %v2389_v52 = vpop.eup %2388  ;;  %v1702_v34 = vmax.f32 %v1670_v50, 0.0 }
 0x4ee   :  { %v1596_v43 = vmul.f32 %v2389_v52, %v3424_v53  ;;  %2223 = vmatprep.subr.msk.bf16.mxu1 %vm3463_vm2, %v2221_v13  ;;  %v1703_v63 = vmax.f32 %v1671_v54, 0.0  ;;  %v1651_v16 = vmul.f32 %v3442_v19, %v1613_v9  ;;  %v1688_v12 = vadd.f32 %v3448_v41, %v1650_v48 }
 0x4ef   :  { %v2391_v7 = vpop.eup %2390 }
 0x4f0   :  { %v1634_v15 = vmul.f32 %v3442_v19, %v1596_v43  ;;  %v1597_v44 = vmul.f32 %v2391_v7, %v3430_v14  ;;  %v2224_v60 = vpack.c.bf16 %v1703_v63, %v1702_v34  ;;  %v1689_v38 = vadd.f32 %v3448_v41, %v1651_v16 }
 0x4f1   :  { %v1720_v53 = vmax.f32 %v1688_v12, 0.0 }
 0x4f2   :  { %v1635_v61 = vmul.f32 %v3442_v19, %v1597_v44  ;;  %2226 = vmatpush3.bf16.xpose.msk.msra.mxu1 %vm3463_vm2, %v2224_v60  ;;  %v1721_v31 = vmax.f32 %v1689_v38, 0.0  ;;  %v1672_v26 = vadd.f32 %v3448_v41, %v1634_v15  ;;  %v1899_v19 = vlaneseq }
 0x4f4   :  { %v2227_v58 = vpack.c.bf16 %v1721_v31, %v1720_v53  ;;  %v1673_v62 = vadd.f32 %v3448_v41, %v1635_v61  ;;  %v1704_v28 = vmax.f32 %v1672_v26, 0.0  ;;  %v1900_v32 = vshrl.u32 %v1899_v19, 7 }
 0x4f6   :  { %2229 = vmatprep.subr.msk.bf16.mxu1 %vm3463_vm2, %v2227_v58  ;;  %v1705_v14 = vmax.f32 %v1673_v62, 0.0  ;;  %v1901_v47 = vsub.s32 0, %v1900_v32 }
 0x4f8   :  { %v2230_v10 = vpack.c.bf16 %v1705_v14, %v1704_v28 }
 0x4fa   :  { %2232 = vmatpush3.bf16.xpose.msk.msra.mxu1 %vm3463_vm2, %v2230_v10 }
 0x4ff   :  { %v1897_v49 = vpop.permute.xlu0 %1896 }
 0x500   :  { %v1902_v20 = vrot.slane %v1897_v49, %v1901_v47 }
 0x501   :  { %2096 = vmatmul.mubr.msk.f32.vlgmr.msra.gmra.mrb[32].mxu1 %vm1196_vm1, %v3478_v57 }
 0x5d4   :  { %v1889_v36 = vpop.f32.mrb[32].mxu1 }
 0x5d5   :  { %v1903_v59 = vadd.f32 %v1902_v20, %v1889_v36  ;;  %v1891_v41 = vpop.f32.mrb[33].mxu1 }
 0x5d6   :  { %v1904_v27 = vadd.f32 %v1902_v20, %v1891_v41 }
 0x5d7   :  { %v2017_v18 = vmul.f32 -1.442695, %v1903_v59 }
 0x5d8   :  { %v2018_v33 = vmul.f32 -1.442695, %v1904_v27 }
 0x5d9   :  { %2392 = vpow2.f32 %v2017_v18 }
 0x5da   :  { %2394 = vpow2.f32 %v2018_v33 }
 0x5e3   :  { %v2393_v37 = vpop.eup %2392 }
 0x5e4   :  { %v2395_v11 = vpop.eup %2394  ;;  %v1911_v22 = vadd.f32 1.0, %v2393_v37 }
 0x5e5   :  { %v1912_v46 = vadd.f32 1.0, %v2395_v11 }
 0x5e6   :  { %2396 = vrcp.f32 %v1911_v22 }
 0x5e7   :  { %2398 = vrcp.f32 %v1912_v46 }
 0x5f0   :  { %v2397_v57 = vpop.eup %2396 }
 0x5f1   :  { %v2399_v2 = vpop.eup %2398 }
 0x5f2   :  { %v1917_v0 = vadd.f32 %v2399_v2, %v2397_v57 }
 0x5f4   :  { %v1918_v8 = vmul.f32 0.5, %v1917_v0 }
 0x5f6   :  { %1919 = vst [vmem:[#allocation3] sm:$0x1] %v1918_v8 }
 0x5f7   :  { %2411 = shalt.err (!%p2408_p4)
}
 0x5f8   :  { %s2412_s23 = scalar_lea.hbm %s3615_s11, 16 }
 0x5f9   :  { %p2413_p5 = scmp.ne.s32.totalorder %s3615_s11, %s2412_s23  ;;  %p2416_p6 = scmp.lt.u32.totalorder %s2412_s23, %s3615_s11 }
 0x5fb   :  { %p2418_p7 = pnand %p2416_p6, %p2413_p5 }
 0x5fd   :  { %2421 = shalt.err (!%p2418_p7)
}
 0x5fe   :  { %1929 = dma.vmem_to_hbm [thread:$0]  %s1927_s19, 16, %s3615_s11, [#allocation4]  }
 0x5ff   :  { %2422 = dma.done.wait [#allocation4], 16  }
 0x600   :  { %2423 = vsyncadd [#allocation4], 4294967280 }
 0x601   :  { %1933 = vsyncpa [#allocation4], 1 }

</bundles_post_ra>
